<compile_context>
chip_gen: v7x
topology: tpu7x:2x2x1
jax: 0.10.0
libtpu: 0.0.40
codegen_flags: <defaults>
</compile_context>

<pallas_src>
import functools

import jax
import jax.numpy as jnp
import numpy as np
from jax.experimental import pallas as pl
from jax.experimental.pallas import tpu as pltpu


def _round_up(x, m):
    return ((x + m - 1) // m) * m


# Keep H resident in VMEM (loaded once per layer) when it is at most this large.
_H_RESIDENT_BYTES = 4 * 1024 * 1024


# ---------------------------------------------------------------------------
# Kernels: one GCN layer, tiled over (row block i, reduction block k).
# ---------------------------------------------------------------------------
def _finalize_block(acc_ref, w_ref, b_ref, o_ref, apply_relu):
    out = jnp.dot(acc_ref[...], w_ref[...],
                  preferred_element_type=jnp.float32) + b_ref[...]
    if apply_relu:
        out = jnp.maximum(out, 0.0)
    o_ref[...] = out.astype(o_ref.dtype)


def gcn_layer_kernel_resident(a_ref, h_ref, w_ref, b_ref, o_ref, acc_ref, *,
                              apply_relu, tile_n):
    """H is fully resident in VMEM; slice the k-th row block in-kernel.
    acc[i] += A[i,k] @ H[k]  (bf16 x bf16 -> f32 MXU accumulate);
    at k == last:  O[i] = relu?( acc[i] @ W + b )."""
    k = pl.program_id(1)

    @pl.when(k == 0)
    def _init():
        acc_ref[...] = jnp.zeros_like(acc_ref)

    start = pl.multiple_of(k * tile_n, tile_n)
    h_blk = h_ref[pl.ds(start, tile_n), :]
    acc_ref[...] += jnp.dot(a_ref[...], h_blk,
                            preferred_element_type=jnp.float32)

    @pl.when(k == pl.num_programs(1) - 1)
    def _finalize():
        _finalize_block(acc_ref, w_ref, b_ref, o_ref, apply_relu)


def gcn_layer_kernel_streamed(a_ref, h_ref, w_ref, b_ref, o_ref, acc_ref, *,
                              apply_relu):
    """H streamed per (i, k) block by the BlockSpec pipeline (large-graph fallback)."""
    k = pl.program_id(1)

    @pl.when(k == 0)
    def _init():
        acc_ref[...] = jnp.zeros_like(acc_ref)

    acc_ref[...] += jnp.dot(a_ref[...], h_ref[...],
                            preferred_element_type=jnp.float32)

    @pl.when(k == pl.num_programs(1) - 1)
    def _finalize():
        _finalize_block(acc_ref, w_ref, b_ref, o_ref, apply_relu)


def gcn_layer(a_bf, h_bf, w_pad, b_pad, *, apply_relu, tile_n, out_dtype):
    """One GCNConv layer via pallas_call. a_bf: [Np,Np] bf16, h_bf: [Np,Fi] bf16,
    w_pad: [Fi,Fo] f32 (already transposed), b_pad: [1,Fo] f32."""
    n_pad = a_bf.shape[0]
    f_in_pad = h_bf.shape[1]
    f_out_pad = w_pad.shape[1]
    num_blocks = n_pad // tile_n
    out_itemsize = jnp.dtype(out_dtype).itemsize

    h_bytes = n_pad * f_in_pad * 2
    h_resident = h_bytes <= _H_RESIDENT_BYTES

    if h_resident:
        kernel = functools.partial(gcn_layer_kernel_resident,
                                   apply_relu=apply_relu, tile_n=tile_n)
        h_spec = pl.BlockSpec((n_pad, f_in_pad), lambda i, k: (0, 0))  # resident
        h_traffic = h_bytes                                            # DMA'd once
    else:
        kernel = functools.partial(gcn_layer_kernel_streamed,
                                   apply_relu=apply_relu)
        h_spec = pl.BlockSpec((tile_n, f_in_pad), lambda i, k: (k, 0))  # streamed
        h_traffic = num_blocks * h_bytes                                # re-streamed per i

    cost = pl.CostEstimate(
        flops=2 * n_pad * n_pad * f_in_pad + 2 * n_pad * f_in_pad * f_out_pad,
        transcendentals=0,
        bytes_accessed=(n_pad * n_pad * 2                       # A_hat (bf16)
                        + h_traffic                             # activations
                        + f_in_pad * f_out_pad * 4              # W
                        + f_out_pad * 4                         # bias
                        + n_pad * f_out_pad * out_itemsize),    # output
    )

    return pl.pallas_call(
        kernel,
        out_shape=jax.ShapeDtypeStruct((n_pad, f_out_pad), out_dtype),
        grid_spec=pltpu.PrefetchScalarGridSpec(
            num_scalar_prefetch=0,
            grid=(num_blocks, num_blocks),
            in_specs=[
                pl.BlockSpec((tile_n, tile_n), lambda i, k: (i, k)),        # A_hat tile
                h_spec,                                                     # H
                pl.BlockSpec((f_in_pad, f_out_pad), lambda i, k: (0, 0)),   # W (resident)
                pl.BlockSpec((1, f_out_pad), lambda i, k: (0, 0)),          # bias (resident)
            ],
            out_specs=pl.BlockSpec((tile_n, f_out_pad), lambda i, k: (i, 0)),
            scratch_shapes=[pltpu.VMEM((tile_n, f_in_pad), jnp.float32)],
        ),
        compiler_params=pltpu.CompilerParams(
            dimension_semantics=("parallel", "arbitrary"),
            vmem_limit_bytes=64 * 1024 * 1024,
        ),
        cost_estimate=cost,
    )(a_bf, h_bf, w_pad, b_pad)


# ---------------------------------------------------------------------------
# Full 4-layer GCN forward.
# ---------------------------------------------------------------------------
def gcn_pallas(a_hat, x, params, *, tile_n=256):
    """params = [(W1, b1), ..., (W4, b4)] with W_l: [F_out, F_in], b_l: [F_out]."""
    n = x.shape[0]
    f_in = x.shape[1]
    out_dim = params[-1][0].shape[0]

    # Biggest tile that still divides the padded node count (>=128 for MXU lanes).
    tile_n = max(128, min(tile_n, _round_up(n, 128)))
    n_pad = _round_up(n, tile_n)
    f_in_pad = _round_up(f_in, 128)

    # Pad adjacency to [n_pad, n_pad]; padded rows/cols are zero.  bf16 stream.
    a_bf = jnp.zeros((n_pad, n_pad), jnp.bfloat16).at[:n, :n].set(
        a_hat.astype(jnp.bfloat16))

    # Pad node features to [n_pad, f_in_pad]; activations stream in bf16.
    h = jnp.zeros((n_pad, f_in_pad), jnp.bfloat16).at[:n, :f_in].set(
        x.astype(jnp.bfloat16))

    num_layers = len(params)
    for layer_idx, (w, b) in enumerate(params):
        f_out, f_in_l = w.shape
        f_out_pad = _round_up(f_out, 128)
        f_in_l_pad = _round_up(f_in_l, 128)

        # Weights pre-transposed to [F_in_pad, F_out_pad]; zero padding keeps the
        # padded lanes inert.  Bias as [1, F_out_pad].
        w_pad = jnp.zeros((f_in_l_pad, f_out_pad), jnp.float32).at[
            :f_in_l, :f_out].set(jnp.asarray(w, jnp.float32).T)
        b_pad = jnp.zeros((1, f_out_pad), jnp.float32).at[0, :f_out].set(
            jnp.asarray(b, jnp.float32))

        last = layer_idx == num_layers - 1
        h = gcn_layer(a_bf, h, w_pad, b_pad,
                      apply_relu=not last,
                      tile_n=tile_n,
                      out_dtype=jnp.float32 if last else jnp.bfloat16)

    return h[:n, :out_dim]


# ---------------------------------------------------------------------------
# Graph / parameter construction and reference (JAX glue).
# ---------------------------------------------------------------------------
def build_normalized_adjacency(edge_index, num_nodes):
    """PyG gcn_norm with add_self_loops=False, edge_weight=1:
    A_hat[i, j] = 1/sqrt(deg_i * deg_j) for each edge j->i (aggregate into target i)."""
    row, col = edge_index[0], edge_index[1]
    deg = jnp.zeros((num_nodes,), jnp.float32).at[col].add(1.0)
    dinv = jnp.where(deg > 0, 1.0 / jnp.sqrt(deg), 0.0)
    norm = dinv[row] * dinv[col]
    a = jnp.zeros((num_nodes, num_nodes), jnp.float32).at[col, row].add(norm)
    return a


def init_gcn_params(key, input_dim, hidden_dim, output_dim):
    """Mirror weights_init: kaiming_uniform(relu) weights, zero biases."""
    dims = [(input_dim, hidden_dim), (hidden_dim, hidden_dim),
            (hidden_dim, hidden_dim), (hidden_dim, output_dim)]
    params = []
    for fan_in, fan_out in dims:
        key, sub = jax.random.split(key)
        gain = np.sqrt(2.0)                      # nonlinearity='relu'
        bound = gain * np.sqrt(3.0 / fan_in)     # kaiming_uniform bound
        w = jax.random.uniform(sub, (fan_out, fan_in), jnp.float32, -bound, bound)
        b = jnp.zeros((fan_out,), jnp.float32)
        params.append((w, b))
    return params


def gcn_reference(a_hat, x, params):
    """Pure-JAX reference mirroring the kernel's mixed precision: A_hat and
    inter-layer activations in bf16, matmul accumulation / bias / ReLU in f32."""
    a = a_hat.astype(jnp.bfloat16).astype(jnp.float32)
    h = x.astype(jnp.bfloat16).astype(jnp.float32)
    for i, (w, b) in enumerate(params):
        out = (a @ h) @ w.T + b[None, :]          # == a @ (h @ w.T) + b
        if i < len(params) - 1:
            out = jnp.maximum(out, 0.0)
            h = out.astype(jnp.bfloat16).astype(jnp.float32)
        else:
            h = out
    return h


if __name__ == "__main__":
    key = jax.random.PRNGKey(0)

    num_nodes = 512
    num_edges = 2048
    input_dim, hidden_dim, output_dim = 8, 32, 4

    k_x, k_src, k_dst, k_p = jax.random.split(key, 4)
    x = jax.random.normal(k_x, (num_nodes, input_dim), jnp.float32)
    edge_index = jnp.stack([
        jax.random.randint(k_src, (num_edges,), 0, num_nodes),
        jax.random.randint(k_dst, (num_edges,), 0, num_nodes),
    ], axis=0)  # [2, E]

    a_hat = build_normalized_adjacency(edge_index, num_nodes)
    params = init_gcn_params(k_p, input_dim, hidden_dim, output_dim)

    gcn_forward = jax.jit(gcn_pallas, static_argnames=("tile_n",))
    out = gcn_forward(a_hat, x, params, tile_n=256)   # 2x2 grid: exercises k-accumulation
    out = jax.block_until_ready(out)
    assert out.shape == (num_nodes, output_dim)

    ref = gcn_reference(a_hat, x, params)
    np.testing.assert_allclose(np.asarray(out), np.asarray(ref),
                               rtol=5e-3, atol=5e-3)

    print("KERNEL_OK")
</pallas_src>

<mosaic_0001>
module attributes {stable_mosaic.version = 11 : i64} {
  func.func @gcn_layer_kernel_resident(%arg0: i32, %arg1: i32, %arg2: memref<256x256xbf16, #tpu.memory_space<vmem>>, %arg3: memref<512x128xbf16, #tpu.memory_space<vmem>>, %arg4: memref<128x128xf32, #tpu.memory_space<vmem>>, %arg5: memref<1x128xf32, #tpu.memory_space<vmem>>, %arg6: memref<256x128xbf16, #tpu.memory_space<vmem>>, %arg7: memref<256x128xf32, #tpu.memory_space<vmem>>) attributes {dimension_semantics = [#tpu.dimension_semantics<parallel>, #tpu.dimension_semantics<arbitrary>], iteration_bounds = array<i64: 2, 2>, scalar_prefetch = 0 : i64, scratch_operands = 1 : i64, tpu.core_type = #tpu.core_type<tc>, window_params = [{transform_indices = @transform_0, window_bounds = array<i64: 256, 256>}, {pipeline_mode = #tpu.pipeline_mode<synchronous>, transform_indices = @transform_1, window_bounds = array<i64: 512, 128>}, {pipeline_mode = #tpu.pipeline_mode<synchronous>, transform_indices = @transform_2, window_bounds = array<i64: 128, 128>}, {pipeline_mode = #tpu.pipeline_mode<synchronous>, transform_indices = @transform_3, window_bounds = array<i64: 1, 128>}, {transform_indices = @transform_4, window_bounds = array<i64: 256, 128>}]} {
    %c0_i32 = arith.constant 0 : i32
    %0 = arith.cmpi eq, %arg1, %c0_i32 : i32
    %1 = arith.extui %0 : i1 to i32
    %c0_i32_0 = arith.constant 0 : i32
    %2 = arith.cmpi ne, %1, %c0_i32_0 : i32
    scf.if %2 {
      %cst_8 = arith.constant 0.000000e+00 : f32
      %15 = vector.broadcast %cst_8 : f32 to vector<256x128xf32>
      %c0_9 = arith.constant 0 : index
      %c0_10 = arith.constant 0 : index
      %16 = vector.load %arg7[%c0_9, %c0_10] : memref<256x128xf32, #tpu.memory_space<vmem>>, vector<256x128xf32>
      tpu.vector_store %arg7[%c0_9, %c0_10], %15 {strides = array<i32>} : memref<256x128xf32, #tpu.memory_space<vmem>>, vector<256x128xf32>,
    } else {
    }
    %c256_i32 = arith.constant 256 : i32
    %3 = arith.muli %arg1, %c256_i32 : i32
    %4 = tpu.assume_multiple %3, 256 : i32
    %5 = arith.index_cast %4 : i32 to index
    %c0 = arith.constant 0 : index
    %6 = vector.load %arg3[%5, %c0] : memref<512x128xbf16, #tpu.memory_space<vmem>>, vector<256x128xbf16>
    %c0_1 = arith.constant 0 : index
    %c0_2 = arith.constant 0 : index
    %7 = vector.load %arg7[%c0_1, %c0_2] : memref<256x128xf32, #tpu.memory_space<vmem>>, vector<256x128xf32>
    %c0_3 = arith.constant 0 : index
    %c0_4 = arith.constant 0 : index
    %8 = vector.load %arg2[%c0_3, %c0_4] : memref<256x256xbf16, #tpu.memory_space<vmem>>, vector<256x256xbf16>
    %cst = arith.constant dense<0.000000e+00> : vector<256x128xf32>
    %9 = tpu.matmul %8, %6, %cst {dimension_numbers = #tpu.dot_dimension_numbers<[1], [0], [0], [1], [0, 0, 1, 1], [], []>} : vector<256x256xbf16>, vector<256x128xbf16>, vector<256x128xf32> -> vector<256x128xf32>
    %10 = arith.addf %7, %9 : vector<256x128xf32>
    %c0_5 = arith.constant 0 : index
    %c0_6 = arith.constant 0 : index
    %11 = vector.load %arg7[%c0_5, %c0_6] : memref<256x128xf32, #tpu.memory_space<vmem>>, vector<256x128xf32>
    tpu.vector_store %arg7[%c0_5, %c0_6], %10 {strides = array<i32>} : memref<256x128xf32, #tpu.memory_space<vmem>>, vector<256x128xf32>,
    %c1_i32 = arith.constant 1 : i32
    %12 = arith.cmpi eq, %arg1, %c1_i32 : i32
    %13 = arith.extui %12 : i1 to i32
    %c0_i32_7 = arith.constant 0 : i32
    %14 = arith.cmpi ne, %13, %c0_i32_7 : i32
    scf.if %14 {
      %c0_8 = arith.constant 0 : index
      %c0_9 = arith.constant 0 : index
      %15 = vector.load %arg7[%c0_8, %c0_9] : memref<256x128xf32, #tpu.memory_space<vmem>>, vector<256x128xf32>
      %c0_10 = arith.constant 0 : index
      %c0_11 = arith.constant 0 : index
      %16 = vector.load %arg4[%c0_10, %c0_11] : memref<128x128xf32, #tpu.memory_space<vmem>>, vector<128x128xf32>
      %cst_12 = arith.constant dense<0.000000e+00> : vector<256x128xf32>
      %17 = tpu.matmul %15, %16, %cst_12 {dimension_numbers = #tpu.dot_dimension_numbers<[1], [0], [0], [1], [0, 0, 1, 1], [], []>} : vector<256x128xf32>, vector<128x128xf32>, vector<256x128xf32> -> vector<256x128xf32>
      %c0_13 = arith.constant 0 : index
      %c0_14 = arith.constant 0 : index
      %18 = vector.load %arg5[%c0_13, %c0_14] : memref<1x128xf32, #tpu.memory_space<vmem>>, vector<1x128xf32>
      %19 = vector.broadcast %18 : vector<1x128xf32> to vector<256x128xf32>
      %20 = arith.addf %17, %19 : vector<256x128xf32>
      %cst_15 = arith.constant 0.000000e+00 : f32
      %21 = vector.broadcast %cst_15 : f32 to vector<256x128xf32>
      %22 = arith.maximumf %20, %21 : vector<256x128xf32>
      %23 = arith.truncf %22 : vector<256x128xf32> to vector<256x128xbf16>
      %c0_16 = arith.constant 0 : index
      %c0_17 = arith.constant 0 : index
      %24 = vector.load %arg6[%c0_16, %c0_17] : memref<256x128xbf16, #tpu.memory_space<vmem>>, vector<256x128xbf16>
      tpu.vector_store %arg6[%c0_16, %c0_17], %23 {strides = array<i32>} : memref<256x128xbf16, #tpu.memory_space<vmem>>, vector<256x128xbf16>,
    } else {
    }
    return
  }
  func.func @transform_0(%arg0: i32, %arg1: i32) -> (i32, i32) {
    %c0_i32 = arith.constant 0 : i32
    return %arg0, %arg1 : i32, i32
  }
  func.func @transform_1(%arg0: i32, %arg1: i32) -> (i32, i32) {
    %c0_i32 = arith.constant 0 : i32
    %c0_i32_0 = arith.constant 0 : i32
    %c0_i32_1 = arith.constant 0 : i32
    return %c0_i32, %c0_i32_0 : i32, i32
  }
  func.func @transform_2(%arg0: i32, %arg1: i32) -> (i32, i32) {
    %c0_i32 = arith.constant 0 : i32
    %c0_i32_0 = arith.constant 0 : i32
    %c0_i32_1 = arith.constant 0 : i32
    return %c0_i32, %c0_i32_0 : i32, i32
  }
  func.func @transform_3(%arg0: i32, %arg1: i32) -> (i32, i32) {
    %c0_i32 = arith.constant 0 : i32
    %c0_i32_0 = arith.constant 0 : i32
    %c0_i32_1 = arith.constant 0 : i32
    return %c0_i32, %c0_i32_0 : i32, i32
  }
  func.func @transform_4(%arg0: i32, %arg1: i32) -> (i32, i32) {
    %c0_i32 = arith.constant 0 : i32
    %c0_i32_0 = arith.constant 0 : i32
    return %arg0, %c0_i32 : i32, i32
  }
}

module attributes {stable_mosaic.version = 11 : i64} {
  func.func @gcn_layer_kernel_resident(%arg0: i32, %arg1: i32, %arg2: memref<256x256xbf16, #tpu.memory_space<vmem>>, %arg3: memref<512x128xbf16, #tpu.memory_space<vmem>>, %arg4: memref<128x128xf32, #tpu.memory_space<vmem>>, %arg5: memref<1x128xf32, #tpu.memory_space<vmem>>, %arg6: memref<256x128xf32, #tpu.memory_space<vmem>>, %arg7: memref<256x128xf32, #tpu.memory_space<vmem>>) attributes {dimension_semantics = [#tpu.dimension_semantics<parallel>, #tpu.dimension_semantics<arbitrary>], iteration_bounds = array<i64: 2, 2>, scalar_prefetch = 0 : i64, scratch_operands = 1 : i64, tpu.core_type = #tpu.core_type<tc>, window_params = [{transform_indices = @transform_0, window_bounds = array<i64: 256, 256>}, {pipeline_mode = #tpu.pipeline_mode<synchronous>, transform_indices = @transform_1, window_bounds = array<i64: 512, 128>}, {pipeline_mode = #tpu.pipeline_mode<synchronous>, transform_indices = @transform_2, window_bounds = array<i64: 128, 128>}, {pipeline_mode = #tpu.pipeline_mode<synchronous>, transform_indices = @transform_3, window_bounds = array<i64: 1, 128>}, {transform_indices = @transform_4, window_bounds = array<i64: 256, 128>}]} {
    %c0_i32 = arith.constant 0 : i32
    %0 = arith.cmpi eq, %arg1, %c0_i32 : i32
    %1 = arith.extui %0 : i1 to i32
    %c0_i32_0 = arith.constant 0 : i32
    %2 = arith.cmpi ne, %1, %c0_i32_0 : i32
    scf.if %2 {
      %cst_8 = arith.constant 0.000000e+00 : f32
      %15 = vector.broadcast %cst_8 : f32 to vector<256x128xf32>
      %c0_9 = arith.constant 0 : index
      %c0_10 = arith.constant 0 : index
      %16 = vector.load %arg7[%c0_9, %c0_10] : memref<256x128xf32, #tpu.memory_space<vmem>>, vector<256x128xf32>
      tpu.vector_store %arg7[%c0_9, %c0_10], %15 {strides = array<i32>} : memref<256x128xf32, #tpu.memory_space<vmem>>, vector<256x128xf32>,
    } else {
    }
    %c256_i32 = arith.constant 256 : i32
    %3 = arith.muli %arg1, %c256_i32 : i32
    %4 = tpu.assume_multiple %3, 256 : i32
    %5 = arith.index_cast %4 : i32 to index
    %c0 = arith.constant 0 : index
    %6 = vector.load %arg3[%5, %c0] : memref<512x128xbf16, #tpu.memory_space<vmem>>, vector<256x128xbf16>
    %c0_1 = arith.constant 0 : index
    %c0_2 = arith.constant 0 : index
    %7 = vector.load %arg7[%c0_1, %c0_2] : memref<256x128xf32, #tpu.memory_space<vmem>>, vector<256x128xf32>
    %c0_3 = arith.constant 0 : index
    %c0_4 = arith.constant 0 : index
    %8 = vector.load %arg2[%c0_3, %c0_4] : memref<256x256xbf16, #tpu.memory_space<vmem>>, vector<256x256xbf16>
    %cst = arith.constant dense<0.000000e+00> : vector<256x128xf32>
    %9 = tpu.matmul %8, %6, %cst {dimension_numbers = #tpu.dot_dimension_numbers<[1], [0], [0], [1], [0, 0, 1, 1], [], []>} : vector<256x256xbf16>, vector<256x128xbf16>, vector<256x128xf32> -> vector<256x128xf32>
    %10 = arith.addf %7, %9 : vector<256x128xf32>
    %c0_5 = arith.constant 0 : index
    %c0_6 = arith.constant 0 : index
    %11 = vector.load %arg7[%c0_5, %c0_6] : memref<256x128xf32, #tpu.memory_space<vmem>>, vector<256x128xf32>
    tpu.vector_store %arg7[%c0_5, %c0_6], %10 {strides = array<i32>} : memref<256x128xf32, #tpu.memory_space<vmem>>, vector<256x128xf32>,
    %c1_i32 = arith.constant 1 : i32
    %12 = arith.cmpi eq, %arg1, %c1_i32 : i32
    %13 = arith.extui %12 : i1 to i32
    %c0_i32_7 = arith.constant 0 : i32
    %14 = arith.cmpi ne, %13, %c0_i32_7 : i32
    scf.if %14 {
      %c0_8 = arith.constant 0 : index
      %c0_9 = arith.constant 0 : index
      %15 = vector.load %arg7[%c0_8, %c0_9] : memref<256x128xf32, #tpu.memory_space<vmem>>, vector<256x128xf32>
      %c0_10 = arith.constant 0 : index
      %c0_11 = arith.constant 0 : index
      %16 = vector.load %arg4[%c0_10, %c0_11] : memref<128x128xf32, #tpu.memory_space<vmem>>, vector<128x128xf32>
      %cst_12 = arith.constant dense<0.000000e+00> : vector<256x128xf32>
      %17 = tpu.matmul %15, %16, %cst_12 {dimension_numbers = #tpu.dot_dimension_numbers<[1], [0], [0], [1], [0, 0, 1, 1], [], []>} : vector<256x128xf32>, vector<128x128xf32>, vector<256x128xf32> -> vector<256x128xf32>
      %c0_13 = arith.constant 0 : index
      %c0_14 = arith.constant 0 : index
      %18 = vector.load %arg5[%c0_13, %c0_14] : memref<1x128xf32, #tpu.memory_space<vmem>>, vector<1x128xf32>
      %19 = vector.broadcast %18 : vector<1x128xf32> to vector<256x128xf32>
      %20 = arith.addf %17, %19 : vector<256x128xf32>
      %c0_15 = arith.constant 0 : index
      %c0_16 = arith.constant 0 : index
      %21 = vector.load %arg6[%c0_15, %c0_16] : memref<256x128xf32, #tpu.memory_space<vmem>>, vector<256x128xf32>
      tpu.vector_store %arg6[%c0_15, %c0_16], %20 {strides = array<i32>} : memref<256x128xf32, #tpu.memory_space<vmem>>, vector<256x128xf32>,
    } else {
    }
    return
  }
  func.func @transform_0(%arg0: i32, %arg1: i32) -> (i32, i32) {
    %c0_i32 = arith.constant 0 : i32
    return %arg0, %arg1 : i32, i32
  }
  func.func @transform_1(%arg0: i32, %arg1: i32) -> (i32, i32) {
    %c0_i32 = arith.constant 0 : i32
    %c0_i32_0 = arith.constant 0 : i32
    %c0_i32_1 = arith.constant 0 : i32
    return %c0_i32, %c0_i32_0 : i32, i32
  }
  func.func @transform_2(%arg0: i32, %arg1: i32) -> (i32, i32) {
    %c0_i32 = arith.constant 0 : i32
    %c0_i32_0 = arith.constant 0 : i32
    %c0_i32_1 = arith.constant 0 : i32
    return %c0_i32, %c0_i32_0 : i32, i32
  }
  func.func @transform_3(%arg0: i32, %arg1: i32) -> (i32, i32) {
    %c0_i32 = arith.constant 0 : i32
    %c0_i32_0 = arith.constant 0 : i32
    %c0_i32_1 = arith.constant 0 : i32
    return %c0_i32, %c0_i32_0 : i32, i32
  }
  func.func @transform_4(%arg0: i32, %arg1: i32) -> (i32, i32) {
    %c0_i32 = arith.constant 0 : i32
    %c0_i32_0 = arith.constant 0 : i32
    return %arg0, %c0_i32 : i32, i32
  }
}

</mosaic_0001>

<bundles_post_ra>
// kernel: gcn_pallas.7
= control target key start
LH: loop header
LB: loop body
LE: loop exit
PB: predicated region body
PF: predicated region fallthrough
CT: control target
= control target key end

     0   :  { %s2675_s0 = inlined_call_operand.hbm [shape: bf16[512,512], index: 0, kind: input, shape index: {}]   ;;  %s2676_s1 = inlined_call_operand.hbm [shape: bf16[512,128], index: 1, kind: input, shape index: {}]   ;;  %s2677_s2 = inlined_call_operand.hbm [shape: f32[128,128], index: 2, kind: input, shape index: {}]   ;;  %s2678_s3 = inlined_call_operand.hbm [shape: f32[1,128], index: 3, kind: input, shape index: {}]   ;;  %s2679_s4 = inlined_call_operand.hbm [shape: f32[512,128], index: 4, kind: output, shape index: {}]  }
   0x1   :  { %2695 = sst [smem:[#allocation20_spill]] %s2676_s1 }
   0x2   :  { %2696 = sst [smem:[#allocation21_spill]] %s2677_s2 }
   0x3   :  { %2697 = sst [smem:[#allocation22_spill]] %s2679_s4 }
   0x4   :  { %9 = vsyncpa [#allocation4], 0 }
   0x5   :  { %11 = vsyncpa [#allocation4 + $0x1], 0 }
   0x6   :  { %12 = vsyncpa [#allocation7], 0 }
   0x7   :  { %13 = vsyncpa [#allocation10], 0 }
   0x8   :  { %14 = vsyncpa [#allocation5], 0 }
   0x9   :  { %16 = vsyncpa [#allocation5 + $0x1], 0  ;;  %s2216_s15 = smov 0   ;;  %s2218_s16 = smov 0  }
   0xa   :  { %s2220_s17 = smov 0   ;;  %s2222_s18 = smov 0  }
   0xb   :  { %s2224_s19 = smov 0   ;;  %s2226_s20 = smov 0  }
   0xc   :  { %s2228_s21 = smov 0   ;;  %s2230_s22 = smov 0  }
   0xd   :  { %s2232_s23 = smov 0   ;;  %s2234_s24 = smov 0  }
   0xe   :  { %s2236_s25 = smov 0  }
   0xf LB: > { %2698 = sst [smem:[#allocation16_spill]] %s2136_s15  ;;  %s1345_s26 = sadd.s32 4294967295, %s2176_s25   ;;  %s2176_s25 = sphi %s2236_s25, %s22_s25   ;;  %s2172_s24 = sphi %s2234_s24, %s2737_s24   ;;  %s2168_s23 = sphi %s2232_s23, %s2736_s23   ;;  %s2164_s22 = sphi %s2230_s22, %s2735_s22   ;;  %s2160_s21 = sphi %s2228_s21, %s2734_s21   ;;  %s2156_s20 = sphi %s2226_s20, %s2733_s20   ;;  %s2152_s19 = sphi %s2224_s19, %s2732_s19   ;;  %s2148_s18 = sphi %s2222_s18, %s2731_s18   ;;  %s2144_s17 = sphi %s2220_s17, %s2730_s17   ;;  %s2140_s16 = sphi %s2218_s16, %s2729_s16   ;;  %s2136_s15 = sphi %s2216_s15, %s2728_s15  }
  0x10   : > { %2699 = sst [smem:[#allocation17_spill]] %s2176_s25  ;;  %s1346_s27 = sadd.s32 4294967294, %s2176_s25  }
  0x11   : > { %p50_p0 = scmp.ne.s32.totalorder %s2156_s20, %s2152_s19  ;;  %p51_p1 = scmp.eq.s32.totalorder %s2176_s25, 0 }
  0x12   : > { %p56_p2 = scmp.ne.s32.totalorder %s2152_s19, %s2148_s18  ;;  %p2276_p3 = scmp.eq.s32.totalorder %s1345_s26, 0 }
  0x13   : > { %p2281_p4 = por %p51_p1, %p50_p0  ;;  %p142_p5 = scmp.ne.s32.totalorder %s2144_s17, %s2140_s16 }
  0x14   : > { %s2700_s29 = scalar_select %p2276_p3, 1, 0 }
  0x15   : > { %p2289_p6 = por %p2276_p3, %p56_p2  ;;  %p143_p7 = scmp.eq.s32.totalorder %s1345_s26, 3 }
  0x16   : > { %p148_p8 = scmp.ne.s32.totalorder %s2140_s16, %s2136_s15  ;;  %p149_p9 = scmp.eq.s32.totalorder %s1346_s27, 3 }
  0x17   : > { %s2702_s6 = scalar_select %p2289_p6, 1, 0 }
  0x18   : > { %p2295_p10 = por %p143_p7, %p142_p5  ;;  %p1347_p11 = scmp.ge.s32.totalorder %s2176_s25, 1 }
  0x19   : > { %p2300_p12 = por %p149_p9, %p148_p8  ;;  %p156_p13 = scmp.lt.s32.totalorder %s2176_s25, 5 }
  0x1a   : > { %s2703_s7 = scalar_select %p2295_p10, 1, 0 }
  0x1b   : > { %s2705_s8 = scalar_select %p2300_p12, 1, 0 }
  0x1c   : > { %2704 = sst [smem:[#allocation18_spill]] %s2703_s7  ;;  %p2305_p0 = pnand %p1347_p11, %p156_p13 }
  0x1d   : > { %2706 = sst [smem:[#allocation19_spill]] %s2705_s8  ;;  %s2178_s10 = smov [#allocation6]  }
  0x1e   : > { %s2707_s9 = scalar_select %p2305_p0, 1, 0 }
  0x1f   : > { %s168_s11 = sshll.u32 %s2178_s10, 4  ;;  %p1743_p1 = pneg %p2305_p0  ;;  %s2309_s11 = int_to_ptr.vmem [resolvable:$true] %s168_s11 }
  0x20   : > { %p1764_p2 = scmp.lt.s32.totalorder %s2176_s25, 4  ;;  %s2179_s14 = smov [#allocation8]  }
  0x21   : > { %p2316_p5 = pnand %p1743_p1, %p2276_p3  ;;  %s181_s18 = sshll.u32 %s2179_s14, 4  ;;  %s2326_s18 = int_to_ptr.vmem [resolvable:$true] %s181_s18 }
  0x22   : > { %p2322_p7 = pnand %p1764_p2, %p2281_p4  ;;  %s2710_s1 = sld [smem:[#allocation20_spill]] }
  0x23   : > { %p2336_p9 = pneg %p2316_p5 }
  0x24   : > { %s2709_s13 = scalar_select %p2322_p7, 1, 0 }
  0x28   : > { %s1932_s10 = scalar_lea.hbm %s2710_s1, 4096 }
  0x29   : > { %p1933_p8 = scmp.ne.s32.totalorder %s2710_s1, %s1932_s10  ;;  %p1939_p13 = scmp.lt.u32.totalorder %s1932_s10, %s2710_s1 }
  0x2b   : > { %p1935_p4 = pnand %p2336_p9, %p1933_p8 }
  0x2d   : > { %p1936_p11 = pneg %p1935_p4 }
  0x2f   : > { %p1941_p1 = pnand %p1939_p13, %p1936_p11 }
  0x31   : > { %1944 = shalt.err (!%p1941_p1)
}
  0x32   : > { %s1945_s28 = scalar_lea.vmem %s2309_s11, 4096  ;;  %p1953_p3 = scmp.lt.s32.totalorder %s2309_s11, %s2309_s11 }
  0x33   : > { %p1946_p2 = scmp.ne.s32.totalorder %s2309_s11, %s1945_s28  ;;  %p1954_p6 = scmp.lt.s32.totalorder %s1945_s28, %s1945_s28 }
  0x35   : > { %p1948_p12 = pnand %p1946_p2, %p2336_p9  ;;  %p1955_p8 = por %p1954_p6, %p1953_p3 }
  0x37   : > { %p1949_p10 = pneg %p1948_p12 }
  0x39   : > { %p1956_p4 = pnand %p1955_p8, %p1949_p10 }
  0x3b   : > { %1959 = shalt.err (!%p1956_p4)
}
  0x3c   : > { %s2180_s30 = smov 64   ;;  %s2181_s8 = smov 4  }
  0x3d   : > { %1746 = dma.hbm_to_vmem [thread:$0]  (!%p2316_p5), %s2710_s1, 4096, %s2309_s11, [#allocation7], %s2180_s30, %s2180_s30, %s2181_s8  }
  0x3e   : > { %s2712_s2 = sld [smem:[#allocation21_spill]] }
  0x44   : > { %s1960_s15 = scalar_lea.hbm %s2712_s2, 2048 }
  0x45   : > { %p1961_p3 = scmp.ne.s32.totalorder %s2712_s2, %s1960_s15  ;;  %p1967_p12 = scmp.lt.u32.totalorder %s1960_s15, %s2712_s2 }
  0x47   : > { %p1963_p6 = pnand %p1961_p3, %p2336_p9 }
  0x49   : > { %p1964_p10 = pneg %p1963_p6 }
  0x4b   : > { %p1969_p11 = pnand %p1967_p12, %p1964_p10 }
  0x4d   : > { %1972 = shalt.err (!%p1969_p11)
}
  0x4e   : > { %s1973_s11 = scalar_lea.vmem %s2326_s18, 2048  ;;  %p1981_p8 = scmp.lt.s32.totalorder %s2326_s18, %s2326_s18 }
  0x4f   : > { %p1974_p13 = scmp.ne.s32.totalorder %s2326_s18, %s1973_s11  ;;  %p1982_p4 = scmp.lt.s32.totalorder %s1973_s11, %s1973_s11 }
  0x51   : > { %p1976_p1 = pnand %p1974_p13, %p2336_p9  ;;  %p1983_p3 = por %p1982_p4, %p1981_p8 }
  0x53   : > { %p1977_p2 = pneg %p1976_p1 }
  0x55   : > { %p1984_p6 = pnand %p1983_p3, %p1977_p2 }
  0x57   : > { %1987 = shalt.err (!%p1984_p6)
}
  0x58   : > { %s2693_s4 = smov 128   ;;  %s2694_s15 = smov 8  }
  0x59   : > { %1749 = dma.hbm_to_vmem [thread:$0]  (!%p2316_p5), %s2712_s2, 2048, %s2326_s18, [#allocation7], %s2693_s4, %s2693_s4, %s2694_s15  }
  0x5a   : > { %s2184_s30 = smov [#allocation9]   ;;  %s1988_s10 = scalar_lea.hbm %s2678_s3, 16 }
  0x5b   : > { %s195_s8 = sshll.u32 %s2184_s30, 4  ;;  %p1989_p10 = scmp.ne.s32.totalorder %s2678_s3, %s1988_s10  ;;  %s196_s8 = int_to_ptr.vmem [resolvable:$true] %s195_s8 }
  0x5c   : > { %p1995_p13 = scmp.lt.u32.totalorder %s1988_s10, %s2678_s3 }
  0x5d   : > { %p1991_p12 = pnand %p1989_p10, %p2336_p9 }
  0x5f   : > { %p1992_p11 = pneg %p1991_p12 }
  0x61   : > { %p1997_p1 = pnand %p1995_p13, %p1992_p11 }
  0x63   : > { %2000 = shalt.err (!%p1997_p1)
}
  0x64   : > { %s2001_s18 = scalar_lea.vmem %s196_s8, 16  ;;  %s2008_s25 = scalar_lea.vmem %s196_s8, 32 }
  0x65   : > { %p2002_p2 = scmp.ne.s32.totalorder %s196_s8, %s2001_s18  ;;  %p2009_p3 = scmp.lt.s32.totalorder %s196_s8, %s196_s8 }
  0x66   : > { %p2010_p6 = scmp.lt.s32.totalorder %s2008_s25, %s2001_s18 }
  0x67   : > { %p2004_p8 = pnand %p2002_p2, %p2336_p9 }
  0x68   : > { %p2011_p0 = por %p2010_p6, %p2009_p3 }
  0x69   : > { %p2005_p4 = pneg %p2004_p8 }
  0x6b   : > { %p2012_p7 = pnand %p2011_p0, %p2005_p4 }
  0x6d   : > { %2015 = shalt.err (!%p2012_p7)
}
  0x6e   : > { %1752 = dma.hbm_to_vmem [thread:$0]  (!%p2316_p5), %s2678_s3, 16, %s196_s8, [#allocation10]  }
  0x6f   : > { %s31_s1 = sadd.s32 1, %s2168_s23  ;;  %s34_s5 = sadd.s32 1, %s2172_s24 }
  0x70   : > { %p32_p9 = scmp.ge.s32.totalorder %s31_s1, 2  ;;  %s206_s26 = sand.u32 1, %s2156_s20  }
  0x71   : > { %s1352_s27 = sshll.u32 %s206_s26, 8  ;;  %s1354_s10 = sshll.u32 %s2168_s23, 1 }
  0x72   : > { %s2739_s1 = smov (%p32_p9, %s31_s1), 0  ;;  %s2741_s5 = smov (!%p32_p9, %s34_s5), %s2172_s24 }
  0x73   : > { %s39_s12 = ssub.s32 %s2168_s23, %s2739_s1  ;;  %p36_p0 = scmp.ge.s32.totalorder %s2741_s5, 2 }
  0x74   : > { %s1421_s14 = sshll.u32 %s2172_s24, 7  ;;  %s210_s28 = scalar_lea.vmem [#allocation3], %s1352_s27 }
  0x75   : > { %s220_s8 = sshll.u32 %s210_s28, 4  ;;  %s2743_s5 = smov (%p36_p0, %s2741_s5), 0  ;;  %s2413_s8 = int_to_ptr.vmem [resolvable:$true] %s220_s8 }
  0x76   : > { %s217_s11 = sadd.s32 %s1421_s14, %s1354_s10  ;;  %s38_s18 = ssub.s32 %s2172_s24, %s2743_s5 }
  0x77   : > { %s1356_s25 = sshll.u32 %s217_s11, 6  ;;  %s40_s7 = sor.u32 %s39_s12, %s38_s18 }
  0x78   : > { %p130_p5 = scmp.eq.s32.totalorder %s38_s18, 0  ;;  %p41_p7 = scmp.eq.s32.totalorder %s40_s7, 0 }
  0x79   : > { %s2420_s15 = scalar_lea.hbm %s2675_s0, %s1356_s25  ;;  %s2713_s27 = sadd.s32 1, %s2144_s17 }
  0x7a   : > { %s2425_s28 = scalar_select %p130_p5, %s2144_s17, %s2713_s27  }
  0x7b   : > { %s2714_s10 = sadd.s32 1, %s2156_s20  ;;  %s2432_s2 = scalar_lea.sflag [#allocation4], %s206_s26 }
  0x7c   : > { %s2430_s14 = scalar_select %p41_p7, %s2156_s20, %s2714_s10  }
  0x7d   : > { %s2016_s12 = scalar_lea.hbm %s2420_s15, 4096  ;;  %p2715_p12 = scmp.ne.s32.totalorder %s2709_s13, 0 }
  0x7e   : > { %p2017_p10 = scmp.ne.s32.totalorder %s2420_s15, %s2016_s12  ;;  %s2021_s18 = scalar_lea.hbm %s2675_s0, 16384 }
  0x7f   : > { %p2018_p11 = pneg %p2715_p12  ;;  %p2022_p2 = scmp.lt.u32.totalorder %s2420_s15, %s2675_s0 }
  0x80   : > { %p2023_p8 = scmp.lt.u32.totalorder %s2021_s18, %s2016_s12  ;;  %p2025_p3 = scmp.lt.u32.totalorder %s2016_s12, %s2420_s15 }
  0x81   : > { %p2019_p13 = pnand %p2018_p11, %p2017_p10 }
  0x82   : > { %p2024_p4 = por %p2023_p8, %p2022_p2 }
  0x83   : > { %p2020_p1 = pneg %p2019_p13 }
  0x84   : > { %p2026_p6 = por %p2025_p3, %p2024_p4 }
  0x86   : > { %p2027_p9 = pnand %p2026_p6, %p2020_p1 }
  0x88   : > { %2030 = shalt.err (!%p2027_p9)
}
  0x89   : > { %s2031_s26 = scalar_lea.vmem %s2413_s8, 4096  ;;  %s2185_s30 = smov [#allocation3]  }
  0x8a   : > { %p2032_p0 = scmp.ne.s32.totalorder %s2413_s8, %s2031_s26  ;;  %s2036_s27 = sshll.u32 %s2185_s30, 4  ;;  %s2037_s27 = int_to_ptr.vmem [resolvable:$false] %s2036_s27 }
  0x8b   : > { %s2038_s10 = scalar_lea.vmem %s2037_s27, 8192  ;;  %p2039_p10 = scmp.lt.s32.totalorder %s2413_s8, %s2037_s27 }
  0x8c   : > { %p2034_p5 = pnand %p2032_p0, %p2018_p11  ;;  %p2040_p13 = scmp.lt.s32.totalorder %s2038_s10, %s2031_s26 }
  0x8e   : > { %p2035_p7 = pneg %p2034_p5  ;;  %p2041_p2 = por %p2040_p13, %p2039_p10 }
  0x90   : > { %p2042_p8 = pnand %p2041_p2, %p2035_p7 }
  0x92   : > { %2045 = shalt.err (!%p2042_p8)
}
  0x93   : > { %s2186_s12 = smov 256   ;;  %s2716_s4 = smov 8  }
  0x94   : > { %s2717_s11 = smov 128   ;;  %p2718_p11 = scmp.ne.s32.totalorder %s2707_s9, 0 }
  0x95   : > { %1756 = dma.hbm_to_vmem [thread:$0]  (!%p2715_p12), %s2420_s15, 4096, %s2413_s8, %s2432_s2, %s2186_s12, %s2717_s11, %s2716_s4  }
  0x96   : > { %232 = sbr.rel (%p2718_p11) target bundleno = 775 (0x307), region = 36  ;;  %s234_s18 = sand.u32 (!%p2718_p11), 1, %s2152_s19  }
  0x97   : > { %s1358_s25 = sshll.u32 (!%p2718_p11), %s234_s18, 8  ;;  %s235_s7 = scalar_lea.sflag (!%p2718_p11), [#allocation4], %s234_s18 }
  0x98   : > { %s2465_s26 = scalar_lea.vmem (!%p2718_p11), [#allocation3], %s1358_s25  ;;  %p2719_p1 = scmp.ne.s32.totalorder (!%p2718_p11), %s2702_s6, 0 }
  0x9d   : > { %2119 = dma.done.wait (%p2719_p1), %s235_s7, 4096  }
  0x9e   : > { %2121 = vsyncadd (%p2719_p1), %s235_s7, 4294963200  ;;  %p2720_p4 = scmp.ne.s32.totalorder %s2700_s29, 0 }
  0xa0   : > { %2123 = dma.done.wait (%p2720_p4), [#allocation7], 6144  }
  0xa1   : > { %2125 = vsyncadd (%p2720_p4), [#allocation7], 4294961152 }
  0xa2   : > { %2127 = dma.done.wait (%p2720_p4), [#allocation10], 16  }
  0xa3   : > { %2129 = vsyncadd (%p2720_p4), [#allocation10], 4294967280  ;;  %s272_s2 = sand.u32 1, %s2140_s16   ;;  %p1363_p12 = scmp.ne.s32.totalorder %s2160_s21, 0 }
  0xa4   : > { %s1362_s9 = sshll.u32 %s272_s2, 8  ;;  %v2187_v0 = vmov (!%p1363_p12), 0.0  }
  0xa5   : > { %s2482_s13 = scalar_lea.vmem [#allocation11], %s1362_s9  ;;  %282 = sbr.rel (%p1363_p12) target bundleno = 181 (0xb5), region = 56  ;;  %283 = vst [vmem:[#allocation2] sm:$0xff] (!%p1363_p12), %v2187_v0  ;;  %284 = vst [vmem:[#allocation2 + $0x8] sm:$0xff] (!%p1363_p12), %v2187_v0 }
  0xa6   : > { %285 = vst [vmem:[#allocation2 + $0x10] sm:$0xff] (!%p1363_p12), %v2187_v0  ;;  %286 = vst [vmem:[#allocation2 + $0x18] sm:$0xff] (!%p1363_p12), %v2187_v0 }
  0xa7   : > { %287 = vst [vmem:[#allocation2 + $0x20] sm:$0xff] (!%p1363_p12), %v2187_v0  ;;  %288 = vst [vmem:[#allocation2 + $0x28] sm:$0xff] (!%p1363_p12), %v2187_v0 }
  0xa8   : > { %289 = vst [vmem:[#allocation2 + $0x30] sm:$0xff] (!%p1363_p12), %v2187_v0  ;;  %290 = vst [vmem:[#allocation2 + $0x38] sm:$0xff] (!%p1363_p12), %v2187_v0 }
  0xa9   : > { %291 = vst [vmem:[#allocation2 + $0x40] sm:$0xff] (!%p1363_p12), %v2187_v0  ;;  %292 = vst [vmem:[#allocation2 + $0x48] sm:$0xff] (!%p1363_p12), %v2187_v0 }
  0xaa   : > { %293 = vst [vmem:[#allocation2 + $0x50] sm:$0xff] (!%p1363_p12), %v2187_v0  ;;  %294 = vst [vmem:[#allocation2 + $0x58] sm:$0xff] (!%p1363_p12), %v2187_v0 }
  0xab   : > { %295 = vst [vmem:[#allocation2 + $0x60] sm:$0xff] (!%p1363_p12), %v2187_v0  ;;  %296 = vst [vmem:[#allocation2 + $0x68] sm:$0xff] (!%p1363_p12), %v2187_v0 }
  0xac   : > { %297 = vst [vmem:[#allocation2 + $0x70] sm:$0xff] %v2187_v0  ;;  %298 = vst [vmem:[#allocation2 + $0x78] sm:$0xff] %v2187_v0 }
  0xad   : > { %299 = vst [vmem:[#allocation2 + $0x80] sm:$0xff] %v2187_v0  ;;  %300 = vst [vmem:[#allocation2 + $0x88] sm:$0xff] %v2187_v0 }
  0xae   : > { %301 = vst [vmem:[#allocation2 + $0x90] sm:$0xff] %v2187_v0  ;;  %302 = vst [vmem:[#allocation2 + $0x98] sm:$0xff] %v2187_v0 }
  0xaf   : > { %303 = vst [vmem:[#allocation2 + $0xa0] sm:$0xff] %v2187_v0  ;;  %304 = vst [vmem:[#allocation2 + $0xa8] sm:$0xff] %v2187_v0 }
  0xb0   : > { %305 = vst [vmem:[#allocation2 + $0xb0] sm:$0xff] %v2187_v0  ;;  %306 = vst [vmem:[#allocation2 + $0xb8] sm:$0xff] %v2187_v0 }
  0xb1   : > { %307 = vst [vmem:[#allocation2 + $0xc0] sm:$0xff] %v2187_v0  ;;  %308 = vst [vmem:[#allocation2 + $0xc8] sm:$0xff] %v2187_v0 }
  0xb2   : > { %309 = vst [vmem:[#allocation2 + $0xd0] sm:$0xff] %v2187_v0  ;;  %310 = vst [vmem:[#allocation2 + $0xd8] sm:$0xff] %v2187_v0 }
  0xb3   : > { %311 = vst [vmem:[#allocation2 + $0xe0] sm:$0xff] %v2187_v0  ;;  %312 = vst [vmem:[#allocation2 + $0xe8] sm:$0xff] %v2187_v0 }
  0xb4   : > { %313 = vst [vmem:[#allocation2 + $0xf0] sm:$0xff] %v2187_v0  ;;  %314 = vst [vmem:[#allocation2 + $0xf8] sm:$0xff] %v2187_v0 }
  0xb5 PF: > { %s1364_s29 = sshll.u32 %s2160_s21, 8  ;;  %v1886_v1 = vld [vmem:[%s2465_s26 + $0x4] ss:$8 sps:$4 sm:$0xff]   ;;  %v1884_v19 = vld [vmem:[%s2465_s26] ss:$8 sps:$4 sm:$0xff]   ;;  %p1414_p3 = scmp.ne.s32.totalorder %s2160_s21, 1 }
  0xb6   : > { %s316_s6 = sshra.s32 %s1364_s29, 3  ;;  %v1889_v2 = vld [vmem:[%s2465_s26 + $0x84] ss:$8 sps:$4 sm:$0xff]   ;;  %704 = vmatprep.mubr.bf16.mxu0 %v1886_v1  ;;  %v1887_v20 = vld [vmem:[%s2465_s26 + $0x80] ss:$8 sps:$4 sm:$0xff]  }
  0xb7   : > { %s1365_s15 = sshll.u32 %s316_s6, 2  ;;  %768 = vmatprep.mubr.bf16.mxu1 %v1889_v2  ;;  %v1890_v21 = vld [vmem:[%s2465_s26 + $0x14] ss:$8 sps:$4 sm:$0xff]   ;;  %v1894_v23 = vld [vmem:[%s2465_s26 + $0x10] ss:$8 sps:$4 sm:$0xff]   ;;  %v352_v51 = vld [vmem:[#allocation2] sm:$0xff] }
  0xb8   : > { %s2488_s8 = scalar_lea.vmem [#allocation6], %s1365_s15  ;;  %v1892_v22 = vld [vmem:[%s2465_s26 + $0x94] ss:$8 sps:$4 sm:$0xff]   ;;  %v1895_v24 = vld [vmem:[%s2465_s26 + $0x90] ss:$8 sps:$4 sm:$0xff]   ;;  %v368_v53 = vld [vmem:[#allocation2 + $0x80] sm:$0xff] }
  0xb9   : > { %v1868_v3 = vld [vmem:[%s2488_s8 + $0x40] sm:$0xff]   ;;  %v1870_v5 = vld [vmem:[%s2488_s8 + $0x48] sm:$0xff]   ;;  %v1872_v7 = vld [vmem:[%s2488_s8 + $0x50] sm:$0xff]  }
  0xba   : > { %v1869_v4 = vld [vmem:[%s2488_s8] sm:$0xff]   ;;  %1423 = vmatprep.subr.bf16.mxu0 %v1868_v3  ;;  %1695 = vmatprep.subr.bf16.mxu1 %v1868_v3  ;;  %v1871_v6 = vld [vmem:[%s2488_s8 + $0x8] sm:$0xff]   ;;  %v1873_v8 = vld [vmem:[%s2488_s8 + $0x10] sm:$0xff]  }
  0xbb   : > { %1424 = vmatpush3.bf16.msra.mxu0 %v1869_v4  ;;  %1703 = vmatpush3.bf16.msra.mxu1 %v1869_v4  ;;  %v1874_v9 = vld [vmem:[%s2488_s8 + $0x58] sm:$0xff]   ;;  %v1876_v11 = vld [vmem:[%s2488_s8 + $0x60] sm:$0xff]   ;;  %v1878_v13 = vld [vmem:[%s2488_s8 + $0x68] sm:$0xff]  }
  0xbc   : > { %1425 = vmatprep.subr.bf16.mxu0 %v1870_v5  ;;  %1696 = vmatprep.subr.bf16.mxu1 %v1870_v5  ;;  %v1875_v10 = vld [vmem:[%s2488_s8 + $0x18] sm:$0xff]   ;;  %v1877_v12 = vld [vmem:[%s2488_s8 + $0x20] sm:$0xff]   ;;  %v1879_v14 = vld [vmem:[%s2488_s8 + $0x28] sm:$0xff]  }
  0xbd   : > { %v1880_v15 = vld [vmem:[%s2488_s8 + $0x70] sm:$0xff]   ;;  %v1882_v17 = vld [vmem:[%s2488_s8 + $0x78] sm:$0xff]   ;;  %v1896_v25 = vld [vmem:[%s2465_s26 + $0x24] ss:$8 sps:$4 sm:$0xff]  }
  0xbe   : > { %v1881_v16 = vld [vmem:[%s2488_s8 + $0x30] sm:$0xff]   ;;  %v1883_v18 = vld [vmem:[%s2488_s8 + $0x38] sm:$0xff]   ;;  %v1898_v26 = vld [vmem:[%s2465_s26 + $0xa4] ss:$8 sps:$4 sm:$0xff]  }
  0xbf   : > { %1426 = vmatpush3.bf16.msra.mxu0 %v1871_v6  ;;  %1704 = vmatpush3.bf16.msra.mxu1 %v1871_v6  ;;  %v1900_v27 = vld [vmem:[%s2465_s26 + $0x20] ss:$8 sps:$4 sm:$0xff]   ;;  %v1902_v29 = vld [vmem:[%s2465_s26 + $0x34] ss:$8 sps:$4 sm:$0xff]   ;;  %v1906_v31 = vld [vmem:[%s2465_s26 + $0x30] ss:$8 sps:$4 sm:$0xff]  }
  0xc0   : > { %1427 = vmatprep.subr.bf16.mxu0 %v1872_v7  ;;  %1697 = vmatprep.subr.bf16.mxu1 %v1872_v7  ;;  %v1901_v28 = vld [vmem:[%s2465_s26 + $0xa0] ss:$8 sps:$4 sm:$0xff]   ;;  %v1904_v30 = vld [vmem:[%s2465_s26 + $0xb4] ss:$8 sps:$4 sm:$0xff]   ;;  %v1907_v32 = vld [vmem:[%s2465_s26 + $0xb0] ss:$8 sps:$4 sm:$0xff]  }
  0xc1   : > { %v1908_v33 = vld [vmem:[%s2465_s26 + $0x44] ss:$8 sps:$4 sm:$0xff]   ;;  %v1912_v35 = vld [vmem:[%s2465_s26 + $0x40] ss:$8 sps:$4 sm:$0xff]   ;;  %v1914_v37 = vld [vmem:[%s2465_s26 + $0x54] ss:$8 sps:$4 sm:$0xff]  }
  0xc2   : > { %v1910_v34 = vld [vmem:[%s2465_s26 + $0xc4] ss:$8 sps:$4 sm:$0xff]   ;;  %v1913_v36 = vld [vmem:[%s2465_s26 + $0xc0] ss:$8 sps:$4 sm:$0xff]   ;;  %v1916_v38 = vld [vmem:[%s2465_s26 + $0xd4] ss:$8 sps:$4 sm:$0xff]  }
  0xc3   : > { %1428 = vmatpush3.bf16.msra.mxu0 %v1873_v8  ;;  %1705 = vmatpush3.bf16.msra.mxu1 %v1873_v8  ;;  %v1918_v39 = vld [vmem:[%s2465_s26 + $0x50] ss:$8 sps:$4 sm:$0xff]   ;;  %v1920_v41 = vld [vmem:[%s2465_s26 + $0x64] ss:$8 sps:$4 sm:$0xff]   ;;  %v1924_v43 = vld [vmem:[%s2465_s26 + $0x60] ss:$8 sps:$4 sm:$0xff]  }
  0xc4   : > { %1429 = vmatprep.subr.bf16.mxu0 %v1874_v9  ;;  %1698 = vmatprep.subr.bf16.mxu1 %v1874_v9  ;;  %v1919_v40 = vld [vmem:[%s2465_s26 + $0xd0] ss:$8 sps:$4 sm:$0xff]   ;;  %v1922_v42 = vld [vmem:[%s2465_s26 + $0xe4] ss:$8 sps:$4 sm:$0xff]   ;;  %v1925_v44 = vld [vmem:[%s2465_s26 + $0xe0] ss:$8 sps:$4 sm:$0xff]  }
  0xc5   : > { %v1926_v45 = vld [vmem:[%s2465_s26 + $0x74] ss:$8 sps:$4 sm:$0xff]   ;;  %v1930_v47 = vld [vmem:[%s2465_s26 + $0x70] ss:$8 sps:$4 sm:$0xff]   ;;  %v353_v59 = vld [vmem:[#allocation2 + $0x8] sm:$0xff] }
  0xc6   : > { %v1928_v46 = vld [vmem:[%s2465_s26 + $0xf4] ss:$8 sps:$4 sm:$0xff]   ;;  %v1931_v48 = vld [vmem:[%s2465_s26 + $0xf0] ss:$8 sps:$4 sm:$0xff]   ;;  %v369_v61 = vld [vmem:[#allocation2 + $0x88] sm:$0xff] }
  0xc7   : > { %1430 = vmatpush3.bf16.msra.mxu0 %v1875_v10  ;;  %1706 = vmatpush3.bf16.msra.mxu1 %v1875_v10  ;;  %v354_v7 = vld [vmem:[#allocation2 + $0x10] sm:$0xff] }
  0xc8   : > { %1431 = vmatprep.subr.bf16.mxu0 %v1876_v11  ;;  %1699 = vmatprep.subr.bf16.mxu1 %v1876_v11  ;;  %v370_v9 = vld [vmem:[#allocation2 + $0x90] sm:$0xff] }
  0xcb   : > { %1432 = vmatpush3.bf16.msra.mxu0 %v1877_v12  ;;  %1707 = vmatpush3.bf16.msra.mxu1 %v1877_v12 }
  0xcc   : > { %1433 = vmatprep.subr.bf16.mxu0 %v1878_v13  ;;  %1700 = vmatprep.subr.bf16.mxu1 %v1878_v13 }
  0xcf   : > { %1434 = vmatpush3.bf16.msra.mxu0 %v1879_v14  ;;  %1708 = vmatpush3.bf16.msra.mxu1 %v1879_v14 }
  0xd0   : > { %1435 = vmatprep.subr.bf16.mxu0 %v1880_v15  ;;  %1701 = vmatprep.subr.bf16.mxu1 %v1880_v15  ;;  %v355_v15 = vld [vmem:[#allocation2 + $0x18] sm:$0xff] }
  0xd3   : > { %1436 = vmatpush3.bf16.msra.mxu0 %v1881_v16  ;;  %1709 = vmatpush3.bf16.msra.mxu1 %v1881_v16 }
  0xd4   : > { %1437 = vmatprep.subr.bf16.mxu0 %v1882_v17  ;;  %1702 = vmatprep.subr.bf16.mxu1 %v1882_v17  ;;  %v371_v17 = vld [vmem:[#allocation2 + $0x98] sm:$0xff] }
  0xd7   : > { %1438 = vmatpush3.bf16.msra.mxu0 %v1883_v18  ;;  %1710 = vmatpush3.bf16.msra.mxu1 %v1883_v18 }
  0xda   : > { %705 = vmatmul.mubr.bf16.vlgmr.msra.gmra.mrb[0].mxu0 %v1884_v19  ;;  %769 = vmatmul.mubr.bf16.vlgmr.msra.gmra.mrb[0].mxu1 %v1887_v20 }
  0xdb   : > { %712 = vmatprep.mubr.bf16.mxu0 %v1890_v21  ;;  %776 = vmatprep.mubr.bf16.mxu1 %v1892_v22 }
  0xe2   : > { %713 = vmatmul.mubr.bf16.gmra.mrb[4].mxu0 %v1894_v23  ;;  %777 = vmatmul.mubr.bf16.gmra.mrb[4].mxu1 %v1895_v24 }
  0xe3   : > { %720 = vmatprep.mubr.bf16.mxu0 %v1896_v25  ;;  %784 = vmatprep.mubr.bf16.mxu1 %v1898_v26 }
  0xea   : > { %721 = vmatmul.mubr.bf16.gmra.mrb[8].mxu0 %v1900_v27  ;;  %785 = vmatmul.mubr.bf16.gmra.mrb[8].mxu1 %v1901_v28  ;;  %v356_v27 = vld [vmem:[#allocation2 + $0x20] sm:$0xff] }
  0xeb   : > { %728 = vmatprep.mubr.bf16.mxu0 %v1902_v29  ;;  %792 = vmatprep.mubr.bf16.mxu1 %v1904_v30  ;;  %v372_v29 = vld [vmem:[#allocation2 + $0xa0] sm:$0xff] }
  0xf2   : > { %729 = vmatmul.mubr.bf16.gmra.mrb[12].mxu0 %v1906_v31  ;;  %793 = vmatmul.mubr.bf16.gmra.mrb[12].mxu1 %v1907_v32 }
  0xf3   : > { %736 = vmatprep.mubr.bf16.mxu0 %v1908_v33  ;;  %800 = vmatprep.mubr.bf16.mxu1 %v1910_v34 }
  0xfa   : > { %737 = vmatmul.mubr.bf16.gmra.mrb[16].mxu0 %v1912_v35  ;;  %801 = vmatmul.mubr.bf16.gmra.mrb[16].mxu1 %v1913_v36  ;;  %v357_v35 = vld [vmem:[#allocation2 + $0x28] sm:$0xff] }
  0xfb   : > { %744 = vmatprep.mubr.bf16.mxu0 %v1914_v37  ;;  %808 = vmatprep.mubr.bf16.mxu1 %v1916_v38  ;;  %v373_v37 = vld [vmem:[#allocation2 + $0xa8] sm:$0xff] }
 0x102   : > { %745 = vmatmul.mubr.bf16.gmra.mrb[20].mxu0 %v1918_v39  ;;  %809 = vmatmul.mubr.bf16.gmra.mrb[20].mxu1 %v1919_v40 }
 0x103   : > { %752 = vmatprep.mubr.bf16.mxu0 %v1920_v41  ;;  %816 = vmatprep.mubr.bf16.mxu1 %v1922_v42 }
 0x10a   : > { %753 = vmatmul.mubr.bf16.gmra.mrb[24].mxu0 %v1924_v43  ;;  %817 = vmatmul.mubr.bf16.gmra.mrb[24].mxu1 %v1925_v44 }
 0x10b   : > { %760 = vmatprep.mubr.bf16.mxu0 %v1926_v45  ;;  %824 = vmatprep.mubr.bf16.mxu1 %v1928_v46 }
 0x112   : > { %761 = vmatmul.mubr.bf16.gmra.mrb[28].mxu0 %v1930_v47  ;;  %825 = vmatmul.mubr.bf16.gmra.mrb[28].mxu1 %v1931_v48  ;;  %v358_v47 = vld [vmem:[#allocation2 + $0x30] sm:$0xff] }
 0x1ad   : > { %v1439_v49 = vpop.f32.mrb[0].mxu0  ;;  %v1487_v50 = vpop.f32.mrb[0].mxu1 }
 0x1ae   : > { %v1440_v52 = vpop.f32.mrb[1].mxu0  ;;  %v1488_v54 = vpop.f32.mrb[1].mxu1 }
 0x1af   : > { %v1441_v55 = vadd.f32 %v1440_v52, %v1439_v49  ;;  %v1489_v56 = vadd.f32 %v1488_v54, %v1487_v50  ;;  %v1442_v57 = vpop.f32.mrb[2].mxu0  ;;  %v1490_v58 = vpop.f32.mrb[2].mxu1  ;;  %v374_v49 = vld [vmem:[#allocation2 + $0xb0] sm:$0xff] }
 0x1b0   : > { %v1443_v60 = vpop.f32.mrb[3].mxu0  ;;  %v1491_v62 = vpop.f32.mrb[3].mxu1 }
 0x1b1   : > { %v833_v63 = vadd.f32 %v1441_v55, %v352_v51  ;;  %v849_v0 = vadd.f32 %v1489_v56, %v368_v53  ;;  %v1444_v1 = vadd.f32 %v1443_v60, %v1442_v57  ;;  %v1492_v2 = vadd.f32 %v1491_v62, %v1490_v58  ;;  %v359_v55 = vld [vmem:[#allocation2 + $0x38] sm:$0xff] }
 0x1b2   : > { %v375_v57 = vld [vmem:[#allocation2 + $0xb8] sm:$0xff] }
 0x1b3   : > { %865 = vst [vmem:[#allocation2] sm:$0xff] %v833_v63  ;;  %881 = vst [vmem:[#allocation2 + $0x80] sm:$0xff] %v849_v0  ;;  %v834_v3 = vadd.f32 %v1444_v1, %v353_v59  ;;  %v850_v4 = vadd.f32 %v1492_v2, %v369_v61 }
 0x1b5   : > { %866 = vst [vmem:[#allocation2 + $0x8] sm:$0xff] %v834_v3  ;;  %882 = vst [vmem:[#allocation2 + $0x88] sm:$0xff] %v850_v4  ;;  %v1445_v5 = vpop.f32.mrb[4].mxu0  ;;  %v1493_v6 = vpop.f32.mrb[4].mxu1  ;;  %v360_v3 = vld [vmem:[#allocation2 + $0x40] sm:$0xff] }
 0x1b6   : > { %v1446_v8 = vpop.f32.mrb[5].mxu0  ;;  %v1494_v10 = vpop.f32.mrb[5].mxu1 }
 0x1b7   : > { %v1447_v11 = vadd.f32 %v1446_v8, %v1445_v5  ;;  %v1495_v12 = vadd.f32 %v1494_v10, %v1493_v6  ;;  %v1448_v13 = vpop.f32.mrb[6].mxu0  ;;  %v1496_v14 = vpop.f32.mrb[6].mxu1  ;;  %v376_v5 = vld [vmem:[#allocation2 + $0xc0] sm:$0xff] }
 0x1b8   : > { %v1449_v16 = vpop.f32.mrb[7].mxu0  ;;  %v1497_v18 = vpop.f32.mrb[7].mxu1 }
 0x1b9   : > { %v835_v19 = vadd.f32 %v1447_v11, %v354_v7  ;;  %v851_v20 = vadd.f32 %v1495_v12, %v370_v9  ;;  %v1450_v21 = vadd.f32 %v1449_v16, %v1448_v13  ;;  %v1498_v22 = vadd.f32 %v1497_v18, %v1496_v14  ;;  %v361_v11 = vld [vmem:[#allocation2 + $0x48] sm:$0xff] }
 0x1ba   : > { %v377_v13 = vld [vmem:[#allocation2 + $0xc8] sm:$0xff] }
 0x1bb   : > { %867 = vst [vmem:[#allocation2 + $0x10] sm:$0xff] %v835_v19  ;;  %883 = vst [vmem:[#allocation2 + $0x90] sm:$0xff] %v851_v20  ;;  %v836_v23 = vadd.f32 %v1450_v21, %v355_v15  ;;  %v852_v24 = vadd.f32 %v1498_v22, %v371_v17 }
 0x1bd   : > { %868 = vst [vmem:[#allocation2 + $0x18] sm:$0xff] %v836_v23  ;;  %884 = vst [vmem:[#allocation2 + $0x98] sm:$0xff] %v852_v24  ;;  %v1451_v25 = vpop.f32.mrb[8].mxu0  ;;  %v1499_v26 = vpop.f32.mrb[8].mxu1  ;;  %v362_v23 = vld [vmem:[#allocation2 + $0x50] sm:$0xff] }
 0x1be   : > { %v1452_v28 = vpop.f32.mrb[9].mxu0  ;;  %v1500_v30 = vpop.f32.mrb[9].mxu1 }
 0x1bf   : > { %v1453_v31 = vadd.f32 %v1452_v28, %v1451_v25  ;;  %v1501_v32 = vadd.f32 %v1500_v30, %v1499_v26  ;;  %v1454_v33 = vpop.f32.mrb[10].mxu0  ;;  %v1502_v34 = vpop.f32.mrb[10].mxu1  ;;  %v378_v25 = vld [vmem:[#allocation2 + $0xd0] sm:$0xff] }
 0x1c0   : > { %v1455_v36 = vpop.f32.mrb[11].mxu0  ;;  %v1503_v38 = vpop.f32.mrb[11].mxu1 }
 0x1c1   : > { %v837_v39 = vadd.f32 %v1453_v31, %v356_v27  ;;  %v853_v40 = vadd.f32 %v1501_v32, %v372_v29  ;;  %v1456_v41 = vadd.f32 %v1455_v36, %v1454_v33  ;;  %v1504_v42 = vadd.f32 %v1503_v38, %v1502_v34  ;;  %v363_v31 = vld [vmem:[#allocation2 + $0x58] sm:$0xff] }
 0x1c2   : > { %v379_v33 = vld [vmem:[#allocation2 + $0xd8] sm:$0xff] }
 0x1c3   : > { %869 = vst [vmem:[#allocation2 + $0x20] sm:$0xff] %v837_v39  ;;  %885 = vst [vmem:[#allocation2 + $0xa0] sm:$0xff] %v853_v40  ;;  %v838_v43 = vadd.f32 %v1456_v41, %v357_v35  ;;  %v854_v44 = vadd.f32 %v1504_v42, %v373_v37 }
 0x1c5   : > { %870 = vst [vmem:[#allocation2 + $0x28] sm:$0xff] %v838_v43  ;;  %886 = vst [vmem:[#allocation2 + $0xa8] sm:$0xff] %v854_v44  ;;  %v1457_v45 = vpop.f32.mrb[12].mxu0  ;;  %v1505_v46 = vpop.f32.mrb[12].mxu1  ;;  %v364_v43 = vld [vmem:[#allocation2 + $0x60] sm:$0xff] }
 0x1c6   : > { %v1458_v48 = vpop.f32.mrb[13].mxu0  ;;  %v1506_v50 = vpop.f32.mrb[13].mxu1 }
 0x1c7   : > { %v1459_v51 = vadd.f32 %v1458_v48, %v1457_v45  ;;  %v1507_v52 = vadd.f32 %v1506_v50, %v1505_v46  ;;  %v1460_v53 = vpop.f32.mrb[14].mxu0  ;;  %v1508_v54 = vpop.f32.mrb[14].mxu1  ;;  %v380_v45 = vld [vmem:[#allocation2 + $0xe0] sm:$0xff] }
 0x1c8   : > { %v1461_v56 = vpop.f32.mrb[15].mxu0  ;;  %v1509_v58 = vpop.f32.mrb[15].mxu1 }
 0x1c9   : > { %v839_v59 = vadd.f32 %v1459_v51, %v358_v47  ;;  %v855_v60 = vadd.f32 %v1507_v52, %v374_v49  ;;  %v1462_v61 = vadd.f32 %v1461_v56, %v1460_v53  ;;  %v1510_v62 = vadd.f32 %v1509_v58, %v1508_v54  ;;  %v365_v51 = vld [vmem:[#allocation2 + $0x68] sm:$0xff] }
 0x1ca   : > { %v381_v53 = vld [vmem:[#allocation2 + $0xe8] sm:$0xff] }
 0x1cb   : > { %871 = vst [vmem:[#allocation2 + $0x30] sm:$0xff] %v839_v59  ;;  %887 = vst [vmem:[#allocation2 + $0xb0] sm:$0xff] %v855_v60  ;;  %v840_v63 = vadd.f32 %v1462_v61, %v359_v55  ;;  %v856_v0 = vadd.f32 %v1510_v62, %v375_v57 }
 0x1cd   : > { %872 = vst [vmem:[#allocation2 + $0x38] sm:$0xff] %v840_v63  ;;  %888 = vst [vmem:[#allocation2 + $0xb8] sm:$0xff] %v856_v0  ;;  %v1463_v1 = vpop.f32.mrb[16].mxu0  ;;  %v1511_v2 = vpop.f32.mrb[16].mxu1  ;;  %v366_v63 = vld [vmem:[#allocation2 + $0x70] sm:$0xff] }
 0x1ce   : > { %v1464_v4 = vpop.f32.mrb[17].mxu0  ;;  %v1512_v6 = vpop.f32.mrb[17].mxu1 }
 0x1cf   : > { %v1465_v7 = vadd.f32 %v1464_v4, %v1463_v1  ;;  %v1513_v8 = vadd.f32 %v1512_v6, %v1511_v2  ;;  %v1466_v9 = vpop.f32.mrb[18].mxu0  ;;  %v1514_v10 = vpop.f32.mrb[18].mxu1  ;;  %v382_v1 = vld [vmem:[#allocation2 + $0xf0] sm:$0xff] }
 0x1d0   : > { %v1467_v12 = vpop.f32.mrb[19].mxu0  ;;  %v1515_v14 = vpop.f32.mrb[19].mxu1 }
 0x1d1   : > { %v841_v15 = vadd.f32 %v1465_v7, %v360_v3  ;;  %v857_v16 = vadd.f32 %v1513_v8, %v376_v5  ;;  %v1468_v17 = vadd.f32 %v1467_v12, %v1466_v9  ;;  %v1516_v18 = vadd.f32 %v1515_v14, %v1514_v10  ;;  %v367_v7 = vld [vmem:[#allocation2 + $0x78] sm:$0xff] }
 0x1d2   : > { %v383_v9 = vld [vmem:[#allocation2 + $0xf8] sm:$0xff] }
 0x1d3   : > { %873 = vst [vmem:[#allocation2 + $0x40] sm:$0xff] %v841_v15  ;;  %889 = vst [vmem:[#allocation2 + $0xc0] sm:$0xff] %v857_v16  ;;  %v842_v19 = vadd.f32 %v1468_v17, %v361_v11  ;;  %v858_v20 = vadd.f32 %v1516_v18, %v377_v13  ;;  %v933_v17 = vld [vmem:[#allocation8] sm:$0xff] (!%p1414_p3)  ;;  %v934_v18 = vld [vmem:[#allocation8 + $0x8] sm:$0xff] (!%p1414_p3) }
 0x1d5   : > { %874 = vst [vmem:[#allocation2 + $0x48] sm:$0xff] %v842_v19  ;;  %890 = vst [vmem:[#allocation2 + $0xc8] sm:$0xff] %v858_v20  ;;  %v1469_v21 = vpop.f32.mrb[20].mxu0  ;;  %v1517_v22 = vpop.f32.mrb[20].mxu1  ;;  %v935_v19 = vld [vmem:[#allocation8 + $0x10] sm:$0xff] (!%p1414_p3)  ;;  %v1663_v20 = vpack.c.bf16 (!%p1414_p3), %v934_v18, %v933_v17 }
 0x1d6   : > { %v1470_v24 = vpop.f32.mrb[21].mxu0  ;;  %v1518_v26 = vpop.f32.mrb[21].mxu1 }
 0x1d7   : > { %v1471_v27 = vadd.f32 %v1470_v24, %v1469_v21  ;;  %v1519_v28 = vadd.f32 %v1518_v26, %v1517_v22  ;;  %v1472_v29 = vpop.f32.mrb[22].mxu0  ;;  %v1520_v30 = vpop.f32.mrb[22].mxu1  ;;  %v936_v21 = vld [vmem:[#allocation8 + $0x18] sm:$0xff] (!%p1414_p3)  ;;  %v938_v24 = vld [vmem:[#allocation8 + $0x28] sm:$0xff] (!%p1414_p3)  ;;  %1664 = vmatprep.subr.bf16.mxu0 (!%p1414_p3), %v1663_v20  ;;  %1711 = vmatprep.subr.bf16.mxu1 (!%p1414_p3), %v1663_v20  ;;  %v901_v26 = vld [vmem:[#allocation2] sm:$0xff] (!%p1414_p3) }
 0x1d8   : > { %v1473_v32 = vpop.f32.mrb[23].mxu0  ;;  %v1521_v34 = vpop.f32.mrb[23].mxu1  ;;  %v1667_v22 = vpack.c.bf16 (!%p1414_p3), %v936_v21, %v935_v19  ;;  %1666 = vmatpush3.bf16.msra.mxu0 (!%p1414_p3), %v1663_v20  ;;  %1719 = vmatpush3.bf16.msra.mxu1 (!%p1414_p3), %v1663_v20 }
 0x1d9   : > { %v843_v35 = vadd.f32 %v1471_v27, %v362_v23  ;;  %v859_v36 = vadd.f32 %v1519_v28, %v378_v25  ;;  %v1474_v37 = vadd.f32 %v1473_v32, %v1472_v29  ;;  %v1522_v38 = vadd.f32 %v1521_v34, %v1520_v30  ;;  %v937_v23 = vld [vmem:[#allocation8 + $0x20] sm:$0xff] (!%p1414_p3)  ;;  %v939_v28 = vld [vmem:[#allocation8 + $0x30] sm:$0xff] (!%p1414_p3)  ;;  %v940_v29 = vld [vmem:[#allocation8 + $0x38] sm:$0xff] (!%p1414_p3)  ;;  %1615 = vmatprep.mubr.f32.mxu0 (!%p1414_p3), %v901_v26 }
 0x1da   : > { %1668 = vmatprep.subr.bf16.mxu0 (!%p1414_p3), %v1667_v22  ;;  %1712 = vmatprep.subr.bf16.mxu1 (!%p1414_p3), %v1667_v22  ;;  %v1671_v25 = vpack.c.bf16 (!%p1414_p3), %v938_v24, %v937_v23  ;;  %v917_v27 = vld [vmem:[#allocation2 + $0x80] sm:$0xff] (!%p1414_p3)  ;;  %v1675_v30 = vpack.c.bf16 (!%p1414_p3), %v940_v29, %v939_v28  ;;  %v942_v32 = vld [vmem:[#allocation8 + $0x48] sm:$0xff] (!%p1414_p3)  ;;  %v943_v34 = vld [vmem:[#allocation8 + $0x50] sm:$0xff] (!%p1414_p3) }
 0x1db   : > { %875 = vst [vmem:[#allocation2 + $0x50] sm:$0xff] %v843_v35  ;;  %891 = vst [vmem:[#allocation2 + $0xd0] sm:$0xff] %v859_v36  ;;  %v844_v39 = vadd.f32 %v1474_v37, %v363_v31  ;;  %v860_v40 = vadd.f32 %v1522_v38, %v379_v33  ;;  %1639 = vmatprep.mubr.f32.mxu1 (!%p1414_p3), %v917_v27  ;;  %v941_v31 = vld [vmem:[#allocation8 + $0x40] sm:$0xff] (!%p1414_p3)  ;;  %v944_v35 = vld [vmem:[#allocation8 + $0x58] sm:$0xff] (!%p1414_p3) }
 0x1dc   : > { %1670 = vmatpush3.bf16.msra.mxu0 (!%p1414_p3), %v1667_v22  ;;  %1720 = vmatpush3.bf16.msra.mxu1 (!%p1414_p3), %v1667_v22  ;;  %v1679_v33 = vpack.c.bf16 (!%p1414_p3), %v942_v32, %v941_v31  ;;  %v1683_v36 = vpack.c.bf16 (!%p1414_p3), %v944_v35, %v943_v34  ;;  %v945_v37 = vld [vmem:[#allocation8 + $0x60] sm:$0xff] (!%p1414_p3)  ;;  %v946_v38 = vld [vmem:[#allocation8 + $0x68] sm:$0xff] (!%p1414_p3) }
 0x1dd   : > { %876 = vst [vmem:[#allocation2 + $0x58] sm:$0xff] %v844_v39  ;;  %892 = vst [vmem:[#allocation2 + $0xd8] sm:$0xff] %v860_v40  ;;  %v1475_v41 = vpop.f32.mrb[24].mxu0  ;;  %v1523_v42 = vpop.f32.mrb[24].mxu1  ;;  %1672 = vmatprep.subr.bf16.mxu0 (!%p1414_p3), %v1671_v25  ;;  %1713 = vmatprep.subr.bf16.mxu1 (!%p1414_p3), %v1671_v25  ;;  %v1687_v39 = vpack.c.bf16 (!%p1414_p3), %v946_v38, %v945_v37  ;;  %v947_v40 = vld [vmem:[#allocation8 + $0x70] sm:$0xff] (!%p1414_p3) }
 0x1de   : > { %v1476_v44 = vpop.f32.mrb[25].mxu0  ;;  %v1524_v46 = vpop.f32.mrb[25].mxu1 }
 0x1df   : > { %v1477_v47 = vadd.f32 %v1476_v44, %v1475_v41  ;;  %v1525_v48 = vadd.f32 %v1524_v46, %v1523_v42  ;;  %v1478_v49 = vpop.f32.mrb[26].mxu0  ;;  %v1526_v50 = vpop.f32.mrb[26].mxu1  ;;  %v948_v41 = vld [vmem:[#allocation8 + $0x78] sm:$0xff] (!%p1414_p3)  ;;  %v918_v44 = vld [vmem:[#allocation2 + $0x88] sm:$0xff] (!%p1414_p3)  ;;  %v919_v46 = vld [vmem:[#allocation2 + $0x90] sm:$0xff] (!%p1414_p3) }
 0x1e0   : > { %v1479_v52 = vpop.f32.mrb[27].mxu0  ;;  %v1527_v54 = vpop.f32.mrb[27].mxu1  ;;  %1674 = vmatpush3.bf16.msra.mxu0 (!%p1414_p3), %v1671_v25  ;;  %1721 = vmatpush3.bf16.msra.mxu1 (!%p1414_p3), %v1671_v25  ;;  %v1691_v42 = vpack.c.bf16 (!%p1414_p3), %v948_v41, %v947_v40 }
 0x1e1   : > { %v845_v55 = vadd.f32 %v1477_v47, %v364_v43  ;;  %v861_v56 = vadd.f32 %v1525_v48, %v380_v45  ;;  %v1480_v57 = vadd.f32 %v1479_v52, %v1478_v49  ;;  %v1528_v58 = vadd.f32 %v1527_v54, %v1526_v50  ;;  %1676 = vmatprep.subr.bf16.mxu0 (!%p1414_p3), %v1675_v30  ;;  %v902_v43 = vld [vmem:[#allocation2 + $0x8] sm:$0xff] (!%p1414_p3)  ;;  %v903_v45 = vld [vmem:[#allocation2 + $0x10] sm:$0xff] (!%p1414_p3)  ;;  %v904_v47 = vld [vmem:[#allocation2 + $0x18] sm:$0xff] (!%p1414_p3) }
 0x1e2   : > { %1714 = vmatprep.subr.bf16.mxu1 (!%p1414_p3), %v1675_v30  ;;  %v920_v48 = vld [vmem:[#allocation2 + $0x98] sm:$0xff] (!%p1414_p3)  ;;  %v905_v49 = vld [vmem:[#allocation2 + $0x20] sm:$0xff] (!%p1414_p3)  ;;  %v922_v52 = vld [vmem:[#allocation2 + $0xa8] sm:$0xff] (!%p1414_p3) }
 0x1e3   : > { %877 = vst [vmem:[#allocation2 + $0x60] sm:$0xff] %v845_v55  ;;  %893 = vst [vmem:[#allocation2 + $0xe0] sm:$0xff] %v861_v56  ;;  %v846_v59 = vadd.f32 %v1480_v57, %v365_v51  ;;  %v862_v60 = vadd.f32 %v1528_v58, %v381_v53  ;;  %v921_v50 = vld [vmem:[#allocation2 + $0xa0] sm:$0xff] (!%p1414_p3)  ;;  %v906_v51 = vld [vmem:[#allocation2 + $0x28] sm:$0xff] (!%p1414_p3) }
 0x1e4   : > { %1678 = vmatpush3.bf16.msra.mxu0 (!%p1414_p3), %v1675_v30  ;;  %1722 = vmatpush3.bf16.msra.mxu1 (!%p1414_p3), %v1675_v30  ;;  %v907_v53 = vld [vmem:[#allocation2 + $0x30] sm:$0xff] (!%p1414_p3)  ;;  %v908_v55 = vld [vmem:[#allocation2 + $0x38] sm:$0xff] (!%p1414_p3)  ;;  %v909_v57 = vld [vmem:[#allocation2 + $0x40] sm:$0xff] (!%p1414_p3) }
 0x1e5   : > { %878 = vst [vmem:[#allocation2 + $0x68] sm:$0xff] %v846_v59  ;;  %894 = vst [vmem:[#allocation2 + $0xe8] sm:$0xff] %v862_v60  ;;  %v1481_v61 = vpop.f32.mrb[28].mxu0  ;;  %v1529_v62 = vpop.f32.mrb[28].mxu1  ;;  %1680 = vmatprep.subr.bf16.mxu0 (!%p1414_p3), %v1679_v33  ;;  %1715 = vmatprep.subr.bf16.mxu1 (!%p1414_p3), %v1679_v33  ;;  %v923_v54 = vld [vmem:[#allocation2 + $0xb0] sm:$0xff] (!%p1414_p3)  ;;  %v924_v56 = vld [vmem:[#allocation2 + $0xb8] sm:$0xff] (!%p1414_p3) }
 0x1e6   : > { %v1482_v0 = vpop.f32.mrb[29].mxu0  ;;  %v1530_v2 = vpop.f32.mrb[29].mxu1  ;;  %v925_v58 = vld [vmem:[#allocation2 + $0xc0] sm:$0xff] (!%p1414_p3)  ;;  %v910_v59 = vld [vmem:[#allocation2 + $0x48] sm:$0xff] (!%p1414_p3) }
 0x1e7   : > { %v1483_v3 = vadd.f32 %v1482_v0, %v1481_v61  ;;  %v1531_v4 = vadd.f32 %v1530_v2, %v1529_v62  ;;  %v1484_v5 = vpop.f32.mrb[30].mxu0  ;;  %v1532_v6 = vpop.f32.mrb[30].mxu1  ;;  %900 = sbr.rel (%p1414_p3) target bundleno = 747 (0x2eb), region = 60  ;;  %v926_v60 = vld [vmem:[#allocation2 + $0xc8] sm:$0xff] (!%p1414_p3)  ;;  %v911_v61 = vld [vmem:[#allocation2 + $0x50] sm:$0xff] (!%p1414_p3)  ;;  %v928_v0 = vld [vmem:[#allocation2 + $0xd8] sm:$0xff] (!%p1414_p3) }
 0x1e8   : > { %v1485_v8 = vpop.f32.mrb[31].mxu0  ;;  %v1533_v10 = vpop.f32.mrb[31].mxu1  ;;  %1682 = vmatpush3.bf16.msra.mxu0 (!%p1414_p3), %v1679_v33  ;;  %1723 = vmatpush3.bf16.msra.mxu1 (!%p1414_p3), %v1679_v33  ;;  %v927_v62 = vld [vmem:[#allocation2 + $0xd0] sm:$0xff] (!%p1414_p3) }
 0x1e9   : > { %v847_v11 = vadd.f32 %v1483_v3, %v366_v63  ;;  %v863_v12 = vadd.f32 %v1531_v4, %v382_v1  ;;  %v1486_v13 = vadd.f32 %v1485_v8, %v1484_v5  ;;  %v1534_v14 = vadd.f32 %v1533_v10, %v1532_v6  ;;  %1684 = vmatprep.subr.bf16.mxu0 (!%p1414_p3), %v1683_v36  ;;  %v912_v63 = vld [vmem:[#allocation2 + $0x58] sm:$0xff] (!%p1414_p3) }
 0x1ea   : > { %1716 = vmatprep.subr.bf16.mxu1 (!%p1414_p3), %v1683_v36  ;;  %v913_v1 = vld [vmem:[#allocation2 + $0x60] sm:$0xff] (!%p1414_p3) }
 0x1eb   : > { %879 = vst [vmem:[#allocation2 + $0x70] sm:$0xff] %v847_v11  ;;  %895 = vst [vmem:[#allocation2 + $0xf0] sm:$0xff] %v863_v12  ;;  %v848_v15 = vadd.f32 %v1486_v13, %v367_v7  ;;  %v864_v16 = vadd.f32 %v1534_v14, %v383_v9  ;;  %v929_v2 = vld [vmem:[#allocation2 + $0xe0] sm:$0xff] (!%p1414_p3) }
 0x1ec   : > { %1686 = vmatpush3.bf16.msra.mxu0 (!%p1414_p3), %v1683_v36  ;;  %1724 = vmatpush3.bf16.msra.mxu1 (!%p1414_p3), %v1683_v36  ;;  %v914_v3 = vld [vmem:[#allocation2 + $0x68] sm:$0xff] (!%p1414_p3)  ;;  %v2537_v9 = vld [vmem:[#allocation9] ss:$0 sm:$0xff] (!%p1414_p3) }
 0x1ed   : > { %880 = vst [vmem:[#allocation2 + $0x78] sm:$0xff] %v848_v15  ;;  %896 = vst [vmem:[#allocation2 + $0xf8] sm:$0xff] %v864_v16  ;;  %1688 = vmatprep.subr.bf16.mxu0 (!%p1414_p3), %v1687_v39  ;;  %1717 = vmatprep.subr.bf16.mxu1 (!%p1414_p3), %v1687_v39  ;;  %v930_v4 = vld [vmem:[#allocation2 + $0xe8] sm:$0xff] (!%p1414_p3) }
 0x1f0   : > { %1690 = vmatpush3.bf16.msra.mxu0 %v1687_v39  ;;  %1725 = vmatpush3.bf16.msra.mxu1 %v1687_v39 }
 0x1f1   : > { %1692 = vmatprep.subr.bf16.mxu0 %v1691_v42  ;;  %1718 = vmatprep.subr.bf16.mxu1 %v1691_v42 }
 0x1f2   : > { %v915_v5 = vld [vmem:[#allocation2 + $0x70] sm:$0xff] }
 0x1f3   : > { %v931_v6 = vld [vmem:[#allocation2 + $0xf0] sm:$0xff] }
 0x1f4   : > { %1694 = vmatpush3.bf16.msra.mxu0 %v1691_v42  ;;  %1726 = vmatpush3.bf16.msra.mxu1 %v1691_v42  ;;  %v916_v7 = vld [vmem:[#allocation2 + $0x78] sm:$0xff] }
 0x1f5   : > { %v932_v8 = vld [vmem:[#allocation2 + $0xf8] sm:$0xff] }
 0x1f7   : > { %1616 = vmatmul.mubr.f32.vlgmr.msra.gmra.mrb[0].mxu0 %v902_v43  ;;  %1640 = vmatmul.mubr.f32.vlgmr.msra.gmra.mrb[0].mxu1 %v918_v44 }
 0x1f8   : > { %1618 = vmatprep.mubr.f32.mxu0 %v903_v45  ;;  %1642 = vmatprep.mubr.f32.mxu1 %v919_v46 }
 0x1fb   : > { %1619 = vmatmul.mubr.f32.gmra.mrb[2].mxu0 %v904_v47  ;;  %1643 = vmatmul.mubr.f32.gmra.mrb[2].mxu1 %v920_v48 }
 0x1fc   : > { %1621 = vmatprep.mubr.f32.mxu0 %v905_v49  ;;  %1645 = vmatprep.mubr.f32.mxu1 %v921_v50 }
 0x1ff   : > { %1622 = vmatmul.mubr.f32.gmra.mrb[4].mxu0 %v906_v51  ;;  %1646 = vmatmul.mubr.f32.gmra.mrb[4].mxu1 %v922_v52 }
 0x200   : > { %1624 = vmatprep.mubr.f32.mxu0 %v907_v53  ;;  %1648 = vmatprep.mubr.f32.mxu1 %v923_v54 }
 0x203   : > { %1625 = vmatmul.mubr.f32.gmra.mrb[6].mxu0 %v908_v55  ;;  %1649 = vmatmul.mubr.f32.gmra.mrb[6].mxu1 %v924_v56 }
 0x204   : > { %1627 = vmatprep.mubr.f32.mxu0 %v909_v57  ;;  %1651 = vmatprep.mubr.f32.mxu1 %v925_v58 }
 0x207   : > { %1628 = vmatmul.mubr.f32.gmra.mrb[8].mxu0 %v910_v59  ;;  %1652 = vmatmul.mubr.f32.gmra.mrb[8].mxu1 %v926_v60 }
 0x208   : > { %1630 = vmatprep.mubr.f32.mxu0 %v911_v61  ;;  %1654 = vmatprep.mubr.f32.mxu1 %v927_v62 }
 0x20b   : > { %1631 = vmatmul.mubr.f32.gmra.mrb[10].mxu0 %v912_v63  ;;  %1655 = vmatmul.mubr.f32.gmra.mrb[10].mxu1 %v928_v0 }
 0x20c   : > { %1633 = vmatprep.mubr.f32.mxu0 %v913_v1  ;;  %1657 = vmatprep.mubr.f32.mxu1 %v929_v2 }
 0x20f   : > { %1634 = vmatmul.mubr.f32.gmra.mrb[12].mxu0 %v914_v3  ;;  %1658 = vmatmul.mubr.f32.gmra.mrb[12].mxu1 %v930_v4 }
 0x210   : > { %1636 = vmatprep.mubr.f32.mxu0 %v915_v5  ;;  %1660 = vmatprep.mubr.f32.mxu1 %v931_v6 }
 0x213   : > { %1637 = vmatmul.mubr.f32.gmra.mrb[14].mxu0 %v916_v7  ;;  %1661 = vmatmul.mubr.f32.gmra.mrb[14].mxu1 %v932_v8 }
 0x2ca   : > { %v1617_v10 = vpop.f32.mrb[0].mxu0  ;;  %v1641_v11 = vpop.f32.mrb[0].mxu1 }
 0x2cb   : > { %v1028_v12 = vadd.f32 %v1617_v10, %v2537_v9  ;;  %v1108_v13 = vadd.f32 %v1641_v11, %v2537_v9  ;;  %v1022_v14 = vpop.f32.mrb[1].mxu0  ;;  %v1102_v15 = vpop.f32.mrb[1].mxu1 }
 0x2cc   : > { %v1023_v16 = vadd.f32 %v2537_v9, %v1022_v14  ;;  %v1103_v17 = vadd.f32 %v2537_v9, %v1102_v15 }
 0x2cd   : > { %1182 = vst [vmem:[%s2482_s13 + $0x8] sm:$0xff] %v1028_v12  ;;  %1198 = vst [vmem:[%s2482_s13 + $0x88] sm:$0xff] %v1108_v13 }
 0x2ce   : > { %1181 = vst [vmem:[%s2482_s13] sm:$0xff] %v1023_v16  ;;  %1197 = vst [vmem:[%s2482_s13 + $0x80] sm:$0xff] %v1103_v17  ;;  %v1620_v18 = vpop.f32.mrb[2].mxu0  ;;  %v1644_v19 = vpop.f32.mrb[2].mxu1 }
 0x2cf   : > { %v1038_v20 = vadd.f32 %v1620_v18, %v2537_v9  ;;  %v1118_v21 = vadd.f32 %v1644_v19, %v2537_v9  ;;  %v1032_v22 = vpop.f32.mrb[3].mxu0  ;;  %v1112_v23 = vpop.f32.mrb[3].mxu1 }
 0x2d0   : > { %v1033_v24 = vadd.f32 %v2537_v9, %v1032_v22  ;;  %v1113_v25 = vadd.f32 %v2537_v9, %v1112_v23 }
 0x2d1   : > { %1184 = vst [vmem:[%s2482_s13 + $0x18] sm:$0xff] %v1038_v20  ;;  %1200 = vst [vmem:[%s2482_s13 + $0x98] sm:$0xff] %v1118_v21 }
 0x2d2   : > { %1183 = vst [vmem:[%s2482_s13 + $0x10] sm:$0xff] %v1033_v24  ;;  %1199 = vst [vmem:[%s2482_s13 + $0x90] sm:$0xff] %v1113_v25  ;;  %v1623_v26 = vpop.f32.mrb[4].mxu0  ;;  %v1647_v27 = vpop.f32.mrb[4].mxu1 }
 0x2d3   : > { %v1048_v28 = vadd.f32 %v1623_v26, %v2537_v9  ;;  %v1128_v29 = vadd.f32 %v1647_v27, %v2537_v9  ;;  %v1042_v30 = vpop.f32.mrb[5].mxu0  ;;  %v1122_v31 = vpop.f32.mrb[5].mxu1 }
 0x2d4   : > { %v1043_v32 = vadd.f32 %v2537_v9, %v1042_v30  ;;  %v1123_v33 = vadd.f32 %v2537_v9, %v1122_v31 }
 0x2d5   : > { %1186 = vst [vmem:[%s2482_s13 + $0x28] sm:$0xff] %v1048_v28  ;;  %1202 = vst [vmem:[%s2482_s13 + $0xa8] sm:$0xff] %v1128_v29 }
 0x2d6   : > { %1185 = vst [vmem:[%s2482_s13 + $0x20] sm:$0xff] %v1043_v32  ;;  %1201 = vst [vmem:[%s2482_s13 + $0xa0] sm:$0xff] %v1123_v33  ;;  %v1626_v34 = vpop.f32.mrb[6].mxu0  ;;  %v1650_v35 = vpop.f32.mrb[6].mxu1 }
 0x2d7   : > { %v1058_v36 = vadd.f32 %v1626_v34, %v2537_v9  ;;  %v1138_v37 = vadd.f32 %v1650_v35, %v2537_v9  ;;  %v1052_v38 = vpop.f32.mrb[7].mxu0  ;;  %v1132_v39 = vpop.f32.mrb[7].mxu1 }
 0x2d8   : > { %v1053_v40 = vadd.f32 %v2537_v9, %v1052_v38  ;;  %v1133_v41 = vadd.f32 %v2537_v9, %v1132_v39 }
 0x2d9   : > { %1188 = vst [vmem:[%s2482_s13 + $0x38] sm:$0xff] %v1058_v36  ;;  %1204 = vst [vmem:[%s2482_s13 + $0xb8] sm:$0xff] %v1138_v37 }
 0x2da   : > { %1187 = vst [vmem:[%s2482_s13 + $0x30] sm:$0xff] %v1053_v40  ;;  %1203 = vst [vmem:[%s2482_s13 + $0xb0] sm:$0xff] %v1133_v41  ;;  %v1629_v42 = vpop.f32.mrb[8].mxu0  ;;  %v1653_v43 = vpop.f32.mrb[8].mxu1 }
 0x2db   : > { %v1068_v44 = vadd.f32 %v1629_v42, %v2537_v9  ;;  %v1148_v45 = vadd.f32 %v1653_v43, %v2537_v9  ;;  %v1062_v46 = vpop.f32.mrb[9].mxu0  ;;  %v1142_v47 = vpop.f32.mrb[9].mxu1 }
 0x2dc   : > { %v1063_v48 = vadd.f32 %v2537_v9, %v1062_v46  ;;  %v1143_v49 = vadd.f32 %v2537_v9, %v1142_v47 }
 0x2dd   : > { %1190 = vst [vmem:[%s2482_s13 + $0x48] sm:$0xff] %v1068_v44  ;;  %1206 = vst [vmem:[%s2482_s13 + $0xc8] sm:$0xff] %v1148_v45 }
 0x2de   : > { %1189 = vst [vmem:[%s2482_s13 + $0x40] sm:$0xff] %v1063_v48  ;;  %1205 = vst [vmem:[%s2482_s13 + $0xc0] sm:$0xff] %v1143_v49  ;;  %v1632_v50 = vpop.f32.mrb[10].mxu0  ;;  %v1656_v51 = vpop.f32.mrb[10].mxu1 }
 0x2df   : > { %v1078_v52 = vadd.f32 %v1632_v50, %v2537_v9  ;;  %v1158_v53 = vadd.f32 %v1656_v51, %v2537_v9  ;;  %v1072_v54 = vpop.f32.mrb[11].mxu0  ;;  %v1152_v55 = vpop.f32.mrb[11].mxu1 }
 0x2e0   : > { %v1073_v56 = vadd.f32 %v2537_v9, %v1072_v54  ;;  %v1153_v57 = vadd.f32 %v2537_v9, %v1152_v55 }
 0x2e1   : > { %1192 = vst [vmem:[%s2482_s13 + $0x58] sm:$0xff] %v1078_v52  ;;  %1208 = vst [vmem:[%s2482_s13 + $0xd8] sm:$0xff] %v1158_v53 }
 0x2e2   : > { %1191 = vst [vmem:[%s2482_s13 + $0x50] sm:$0xff] %v1073_v56  ;;  %1207 = vst [vmem:[%s2482_s13 + $0xd0] sm:$0xff] %v1153_v57  ;;  %v1635_v58 = vpop.f32.mrb[12].mxu0  ;;  %v1659_v59 = vpop.f32.mrb[12].mxu1 }
 0x2e3   : > { %v1088_v60 = vadd.f32 %v1635_v58, %v2537_v9  ;;  %v1168_v61 = vadd.f32 %v1659_v59, %v2537_v9  ;;  %v1082_v62 = vpop.f32.mrb[13].mxu0  ;;  %v1162_v63 = vpop.f32.mrb[13].mxu1 }
 0x2e4   : > { %v1083_v0 = vadd.f32 %v2537_v9, %v1082_v62  ;;  %v1163_v1 = vadd.f32 %v2537_v9, %v1162_v63 }
 0x2e5   : > { %1194 = vst [vmem:[%s2482_s13 + $0x68] sm:$0xff] %v1088_v60  ;;  %1210 = vst [vmem:[%s2482_s13 + $0xe8] sm:$0xff] %v1168_v61 }
 0x2e6   : > { %1193 = vst [vmem:[%s2482_s13 + $0x60] sm:$0xff] %v1083_v0  ;;  %1209 = vst [vmem:[%s2482_s13 + $0xe0] sm:$0xff] %v1163_v1  ;;  %v1638_v2 = vpop.f32.mrb[14].mxu0  ;;  %v1662_v3 = vpop.f32.mrb[14].mxu1 }
 0x2e7   : > { %v1098_v4 = vadd.f32 %v1638_v2, %v2537_v9  ;;  %v1178_v5 = vadd.f32 %v1662_v3, %v2537_v9  ;;  %v1092_v6 = vpop.f32.mrb[15].mxu0  ;;  %v1172_v7 = vpop.f32.mrb[15].mxu1 }
 0x2e8   : > { %v1093_v8 = vadd.f32 %v2537_v9, %v1092_v6  ;;  %v1173_v10 = vadd.f32 %v2537_v9, %v1172_v7 }
 0x2e9   : > { %1196 = vst [vmem:[%s2482_s13 + $0x78] sm:$0xff] %v1098_v4  ;;  %1212 = vst [vmem:[%s2482_s13 + $0xf8] sm:$0xff] %v1178_v5 }
 0x2ea   : > { %1195 = vst [vmem:[%s2482_s13 + $0x70] sm:$0xff] %v1093_v8  ;;  %1211 = vst [vmem:[%s2482_s13 + $0xf0] sm:$0xff] %v1173_v10 }
 0x2eb PF: > { %s2721_s21 = sld [smem:[#allocation18_spill]]  ;;  %s1422_s30 = sshll.u32 %s2164_s22, 12 }
 0x2ec   : > { %s2722_s12 = sld [smem:[#allocation22_spill]]  ;;  %s1227_s11 = sshll.u32 %s2482_s13, 4  ;;  %s2610_s11 = int_to_ptr.vmem [resolvable:$true] %s1227_s11 }
 0x2ed   : > { %s2614_s18 = scalar_lea.sflag [#allocation5], %s272_s2  ;;  %s2046_s25 = scalar_lea.vmem %s2610_s11, 4096 }
 0x2ee   : > { %p2047_p6 = scmp.ne.s32.totalorder %s2610_s11, %s2046_s25  ;;  %s2188_s22 = smov [#allocation11]  }
 0x2ef   : > { %s2050_s7 = sshll.u32 %s2188_s22, 4  ;;  %s2051_s7 = int_to_ptr.vmem [resolvable:$false] %s2050_s7 }
 0x2f0   : > { %s2052_s26 = scalar_lea.vmem %s2051_s7, 8192  ;;  %p2053_p7 = scmp.lt.s32.totalorder %s2610_s11, %s2051_s7 }
 0x2f1   : > { %p2723_p9 = scmp.ne.s32.totalorder %s2721_s21, 0  ;;  %p2054_p10 = scmp.lt.s32.totalorder %s2052_s26, %s2046_s25 }
 0x2f2   : > { %s2607_s4 = scalar_lea.hbm %s2722_s12, %s1422_s30 }
 0x2f3   : > { %p2048_p0 = pnand %p2047_p6, %p2723_p9  ;;  %p2055_p13 = por %p2054_p10, %p2053_p7 }
 0x2f5   : > { %p2049_p5 = pneg %p2048_p0 }
 0x2f7   : > { %p2056_p2 = pnand %p2055_p13, %p2049_p5 }
 0x2f9   : > { %2059 = shalt.err (!%p2056_p2)
}
 0x2fa   : > { %s2060_s2 = scalar_lea.hbm %s2607_s4, 4096  ;;  %s2064_s29 = scalar_lea.hbm %s2722_s12, 8192 }
 0x2fb   : > { %p2061_p8 = scmp.ne.s32.totalorder %s2607_s4, %s2060_s2  ;;  %p2065_p4 = scmp.lt.u32.totalorder %s2607_s4, %s2722_s12 }
 0x2fc   : > { %p2066_p12 = scmp.lt.u32.totalorder %s2064_s29, %s2060_s2  ;;  %p2068_p6 = scmp.lt.u32.totalorder %s2060_s2, %s2607_s4 }
 0x2fd   : > { %p2062_p11 = pnand %p2061_p8, %p2723_p9 }
 0x2fe   : > { %p2067_p3 = por %p2066_p12, %p2065_p4 }
 0x2ff   : > { %p2063_p1 = pneg %p2062_p11 }
 0x300   : > { %p2069_p0 = por %p2068_p6, %p2067_p3 }
 0x302   : > { %p2070_p5 = pnand %p2069_p0, %p2063_p1 }
 0x304   : > { %2073 = shalt.err (!%p2070_p5)
}
 0x305   : > { %s2189_s8 = smov 128   ;;  %s2190_s30 = smov 8  }
 0x306   : > { %1741 = dma.vmem_to_hbm [thread:$0]  (%p2723_p9), %s2610_s11, 4096, %s2607_s4, %s2614_s18, %s2189_s8, %s2189_s8, %s2190_s30  }
 0x307 PF: > { %s2724_s27 = sld [smem:[#allocation17_spill]]  ;;  %s2725_s10 = sld [smem:[#allocation16_spill]] }
 0x308   : > { %s2726_s25 = sld [smem:[#allocation19_spill]] }
 0x30d   : > { %p1768_p7 = scmp.ge.s32.totalorder %s2724_s27, 2  ;;  %s1242_s22 = sand.u32 1, %s2725_s10  }
 0x30e   : > { %p2727_p10 = scmp.ne.s32.totalorder %s2726_s25, 0  ;;  %s1243_s7 = scalar_lea.sflag [#allocation5], %s1242_s22 }
 0x310   : > { %p1758_p13 = pnand %p1768_p7, %p2727_p10 }
 0x312   : > { %2131 = dma.done.wait (!%p1758_p13), %s1243_s7, 4096  }
 0x313   : > { %2133 = vsyncadd (!%p1758_p13), %s1243_s7, 4294963200  ;;  %s22_s25 = sadd.s32 1, %s2724_s27   ;;  %s2728_s15 = smov %s2140_s16 }
 0x314   : > { %p19_p2 = scmp.ge.s32.totalorder %s22_s25, 6   ;;  %s2729_s16 = smov %s2144_s17 }
 0x315   : > { %s2730_s17 = smov %s2425_s28  ;;  %s2731_s18 = smov %s2152_s19 }
 0x316   : > { %s2732_s19 = smov %s2156_s20  ;;  %s2733_s20 = smov %s2430_s14 }
 0x317   : > { %s2734_s21 = smov %s2168_s23  ;;  %s2735_s22 = smov %s2172_s24 }
 0x318   : > { %s2736_s23 = smov %s2739_s1  ;;  %s2737_s24 = smov %s2743_s5 }
 0x319   :  { %21 = sbr.rel (!%p19_p2) target bundleno = 15 (0xf), region = 102 }
 0x320   :  { %1248 = vsyncpa [#allocation4], 1 }
 0x321   :  { %1250 = vsyncpa [#allocation4 + $0x1], 1 }
 0x322   :  { %1251 = vsyncpa [#allocation7], 1 }
 0x323   :  { %1252 = vsyncpa [#allocation10], 1 }
 0x324   :  { %1253 = vsyncpa [#allocation5], 1 }
 0x325   :  { %1255 = vsyncpa [#allocation5 + $0x1], 1 }

// kernel: gcn_pallas.4
= control target key start
LH: loop header
LB: loop body
LE: loop exit
PB: predicated region body
PF: predicated region fallthrough
CT: control target
= control target key end

     0   :  { %s2978_s0 = inlined_call_operand.hbm [shape: bf16[512,512], index: 0, kind: input, shape index: {}]   ;;  %s2979_s1 = inlined_call_operand.hbm [shape: bf16[512,128], index: 1, kind: input, shape index: {}]   ;;  %s2980_s2 = inlined_call_operand.hbm [shape: f32[128,128], index: 2, kind: input, shape index: {}]   ;;  %s2981_s3 = inlined_call_operand.hbm [shape: f32[1,128], index: 3, kind: input, shape index: {}]   ;;  %s2982_s4 = inlined_call_operand.hbm [shape: bf16[512,128], index: 4, kind: output, shape index: {}]  }
   0x1   :  { %2998 = sst [smem:[#allocation20_spill]] %s2979_s1 }
   0x2   :  { %2999 = sst [smem:[#allocation21_spill]] %s2980_s2 }
   0x3   :  { %3000 = sst [smem:[#allocation22_spill]] %s2982_s4 }
   0x4   :  { %9 = vsyncpa [#allocation4], 0 }
   0x5   :  { %11 = vsyncpa [#allocation4 + $0x1], 0 }
   0x6   :  { %12 = vsyncpa [#allocation7], 0 }
   0x7   :  { %13 = vsyncpa [#allocation10], 0 }
   0x8   :  { %14 = vsyncpa [#allocation5], 0 }
   0x9   :  { %16 = vsyncpa [#allocation5 + $0x1], 0  ;;  %s2535_s15 = smov 0   ;;  %s2537_s16 = smov 0  }
   0xa   :  { %s2539_s17 = smov 0   ;;  %s2541_s18 = smov 0  }
   0xb   :  { %s2543_s19 = smov 0   ;;  %s2545_s20 = smov 0  }
   0xc   :  { %s2547_s21 = smov 0   ;;  %s2549_s22 = smov 0  }
   0xd   :  { %s2551_s23 = smov 0   ;;  %s2553_s24 = smov 0  }
   0xe   :  { %s2555_s25 = smov 0  }
   0xf LB: > { %3001 = sst [smem:[#allocation16_spill]] %s2455_s15  ;;  %s1505_s26 = sadd.s32 4294967295, %s2495_s25   ;;  %s2495_s25 = sphi %s2555_s25, %s22_s25   ;;  %s2491_s24 = sphi %s2553_s24, %s3040_s24   ;;  %s2487_s23 = sphi %s2551_s23, %s3039_s23   ;;  %s2483_s22 = sphi %s2549_s22, %s3038_s22   ;;  %s2479_s21 = sphi %s2547_s21, %s3037_s21   ;;  %s2475_s20 = sphi %s2545_s20, %s3036_s20   ;;  %s2471_s19 = sphi %s2543_s19, %s3035_s19   ;;  %s2467_s18 = sphi %s2541_s18, %s3034_s18   ;;  %s2463_s17 = sphi %s2539_s17, %s3033_s17   ;;  %s2459_s16 = sphi %s2537_s16, %s3032_s16   ;;  %s2455_s15 = sphi %s2535_s15, %s3031_s15  }
  0x10   : > { %3002 = sst [smem:[#allocation17_spill]] %s2495_s25  ;;  %s1506_s27 = sadd.s32 4294967294, %s2495_s25  }
  0x11   : > { %p50_p0 = scmp.ne.s32.totalorder %s2475_s20, %s2471_s19  ;;  %p51_p1 = scmp.eq.s32.totalorder %s2495_s25, 0 }
  0x12   : > { %p56_p2 = scmp.ne.s32.totalorder %s2471_s19, %s2467_s18  ;;  %p2595_p3 = scmp.eq.s32.totalorder %s1505_s26, 0 }
  0x13   : > { %p2600_p4 = por %p51_p1, %p50_p0  ;;  %p142_p5 = scmp.ne.s32.totalorder %s2463_s17, %s2459_s16 }
  0x14   : > { %s3003_s29 = scalar_select %p2595_p3, 1, 0 }
  0x15   : > { %p2608_p6 = por %p2595_p3, %p56_p2  ;;  %p143_p7 = scmp.eq.s32.totalorder %s1505_s26, 3 }
  0x16   : > { %p148_p8 = scmp.ne.s32.totalorder %s2459_s16, %s2455_s15  ;;  %p149_p9 = scmp.eq.s32.totalorder %s1506_s27, 3 }
  0x17   : > { %s3005_s6 = scalar_select %p2608_p6, 1, 0 }
  0x18   : > { %p2614_p10 = por %p143_p7, %p142_p5  ;;  %p1507_p11 = scmp.ge.s32.totalorder %s2495_s25, 1 }
  0x19   : > { %p2619_p12 = por %p149_p9, %p148_p8  ;;  %p156_p13 = scmp.lt.s32.totalorder %s2495_s25, 5 }
  0x1a   : > { %s3006_s7 = scalar_select %p2614_p10, 1, 0 }
  0x1b   : > { %s3008_s8 = scalar_select %p2619_p12, 1, 0 }
  0x1c   : > { %3007 = sst [smem:[#allocation18_spill]] %s3006_s7  ;;  %p2624_p0 = pnand %p1507_p11, %p156_p13 }
  0x1d   : > { %3009 = sst [smem:[#allocation19_spill]] %s3008_s8  ;;  %s2497_s10 = smov [#allocation6]  }
  0x1e   : > { %s3010_s9 = scalar_select %p2624_p0, 1, 0 }
  0x1f   : > { %s168_s11 = sshll.u32 %s2497_s10, 4  ;;  %p2062_p1 = pneg %p2624_p0  ;;  %s2628_s11 = int_to_ptr.vmem [resolvable:$true] %s168_s11 }
  0x20   : > { %p2083_p2 = scmp.lt.s32.totalorder %s2495_s25, 4  ;;  %s2498_s14 = smov [#allocation8]  }
  0x21   : > { %p2635_p5 = pnand %p2062_p1, %p2595_p3  ;;  %s181_s18 = sshll.u32 %s2498_s14, 4  ;;  %s2645_s18 = int_to_ptr.vmem [resolvable:$true] %s181_s18 }
  0x22   : > { %p2641_p7 = pnand %p2083_p2, %p2600_p4  ;;  %s3013_s1 = sld [smem:[#allocation20_spill]] }
  0x23   : > { %p2655_p9 = pneg %p2635_p5 }
  0x24   : > { %s3012_s13 = scalar_select %p2641_p7, 1, 0 }
  0x28   : > { %s2251_s10 = scalar_lea.hbm %s3013_s1, 4096 }
  0x29   : > { %p2252_p8 = scmp.ne.s32.totalorder %s3013_s1, %s2251_s10  ;;  %p2258_p13 = scmp.lt.u32.totalorder %s2251_s10, %s3013_s1 }
  0x2b   : > { %p2254_p4 = pnand %p2655_p9, %p2252_p8 }
  0x2d   : > { %p2255_p11 = pneg %p2254_p4 }
  0x2f   : > { %p2260_p1 = pnand %p2258_p13, %p2255_p11 }
  0x31   : > { %2263 = shalt.err (!%p2260_p1)
}
  0x32   : > { %s2264_s28 = scalar_lea.vmem %s2628_s11, 4096  ;;  %p2272_p3 = scmp.lt.s32.totalorder %s2628_s11, %s2628_s11 }
  0x33   : > { %p2265_p2 = scmp.ne.s32.totalorder %s2628_s11, %s2264_s28  ;;  %p2273_p6 = scmp.lt.s32.totalorder %s2264_s28, %s2264_s28 }
  0x35   : > { %p2267_p12 = pnand %p2265_p2, %p2655_p9  ;;  %p2274_p8 = por %p2273_p6, %p2272_p3 }
  0x37   : > { %p2268_p10 = pneg %p2267_p12 }
  0x39   : > { %p2275_p4 = pnand %p2274_p8, %p2268_p10 }
  0x3b   : > { %2278 = shalt.err (!%p2275_p4)
}
  0x3c   : > { %s2499_s30 = smov 64   ;;  %s2500_s8 = smov 4  }
  0x3d   : > { %2065 = dma.hbm_to_vmem [thread:$0]  (!%p2635_p5), %s3013_s1, 4096, %s2628_s11, [#allocation7], %s2499_s30, %s2499_s30, %s2500_s8  }
  0x3e   : > { %s3015_s2 = sld [smem:[#allocation21_spill]] }
  0x44   : > { %s2279_s15 = scalar_lea.hbm %s3015_s2, 2048 }
  0x45   : > { %p2280_p3 = scmp.ne.s32.totalorder %s3015_s2, %s2279_s15  ;;  %p2286_p12 = scmp.lt.u32.totalorder %s2279_s15, %s3015_s2 }
  0x47   : > { %p2282_p6 = pnand %p2280_p3, %p2655_p9 }
  0x49   : > { %p2283_p10 = pneg %p2282_p6 }
  0x4b   : > { %p2288_p11 = pnand %p2286_p12, %p2283_p10 }
  0x4d   : > { %2291 = shalt.err (!%p2288_p11)
}
  0x4e   : > { %s2292_s11 = scalar_lea.vmem %s2645_s18, 2048  ;;  %p2300_p8 = scmp.lt.s32.totalorder %s2645_s18, %s2645_s18 }
  0x4f   : > { %p2293_p13 = scmp.ne.s32.totalorder %s2645_s18, %s2292_s11  ;;  %p2301_p4 = scmp.lt.s32.totalorder %s2292_s11, %s2292_s11 }
  0x51   : > { %p2295_p1 = pnand %p2293_p13, %p2655_p9  ;;  %p2302_p3 = por %p2301_p4, %p2300_p8 }
  0x53   : > { %p2296_p2 = pneg %p2295_p1 }
  0x55   : > { %p2303_p6 = pnand %p2302_p3, %p2296_p2 }
  0x57   : > { %2306 = shalt.err (!%p2303_p6)
}
  0x58   : > { %s2996_s4 = smov 128   ;;  %s2997_s15 = smov 8  }
  0x59   : > { %2068 = dma.hbm_to_vmem [thread:$0]  (!%p2635_p5), %s3015_s2, 2048, %s2645_s18, [#allocation7], %s2996_s4, %s2996_s4, %s2997_s15  }
  0x5a   : > { %s2503_s30 = smov [#allocation9]   ;;  %s2307_s10 = scalar_lea.hbm %s2981_s3, 16 }
  0x5b   : > { %s195_s8 = sshll.u32 %s2503_s30, 4  ;;  %p2308_p10 = scmp.ne.s32.totalorder %s2981_s3, %s2307_s10  ;;  %s196_s8 = int_to_ptr.vmem [resolvable:$true] %s195_s8 }
  0x5c   : > { %p2314_p13 = scmp.lt.u32.totalorder %s2307_s10, %s2981_s3 }
  0x5d   : > { %p2310_p12 = pnand %p2308_p10, %p2655_p9 }
  0x5f   : > { %p2311_p11 = pneg %p2310_p12 }
  0x61   : > { %p2316_p1 = pnand %p2314_p13, %p2311_p11 }
  0x63   : > { %2319 = shalt.err (!%p2316_p1)
}
  0x64   : > { %s2320_s18 = scalar_lea.vmem %s196_s8, 16  ;;  %s2327_s25 = scalar_lea.vmem %s196_s8, 32 }
  0x65   : > { %p2321_p2 = scmp.ne.s32.totalorder %s196_s8, %s2320_s18  ;;  %p2328_p3 = scmp.lt.s32.totalorder %s196_s8, %s196_s8 }
  0x66   : > { %p2329_p6 = scmp.lt.s32.totalorder %s2327_s25, %s2320_s18 }
  0x67   : > { %p2323_p8 = pnand %p2321_p2, %p2655_p9 }
  0x68   : > { %p2330_p0 = por %p2329_p6, %p2328_p3 }
  0x69   : > { %p2324_p4 = pneg %p2323_p8 }
  0x6b   : > { %p2331_p7 = pnand %p2330_p0, %p2324_p4 }
  0x6d   : > { %2334 = shalt.err (!%p2331_p7)
}
  0x6e   : > { %2071 = dma.hbm_to_vmem [thread:$0]  (!%p2635_p5), %s2981_s3, 16, %s196_s8, [#allocation10]  }
  0x6f   : > { %s31_s1 = sadd.s32 1, %s2487_s23  ;;  %s34_s5 = sadd.s32 1, %s2491_s24 }
  0x70   : > { %p32_p9 = scmp.ge.s32.totalorder %s31_s1, 2  ;;  %s206_s26 = sand.u32 1, %s2475_s20  }
  0x71   : > { %s1512_s27 = sshll.u32 %s206_s26, 8  ;;  %s1514_s10 = sshll.u32 %s2487_s23, 1 }
  0x72   : > { %s3042_s1 = smov (%p32_p9, %s31_s1), 0  ;;  %s3044_s5 = smov (!%p32_p9, %s34_s5), %s2491_s24 }
  0x73   : > { %s39_s12 = ssub.s32 %s2487_s23, %s3042_s1  ;;  %p36_p0 = scmp.ge.s32.totalorder %s3044_s5, 2 }
  0x74   : > { %s1613_s14 = sshll.u32 %s2491_s24, 7  ;;  %s210_s28 = scalar_lea.vmem [#allocation3], %s1512_s27 }
  0x75   : > { %s220_s8 = sshll.u32 %s210_s28, 4  ;;  %s3046_s5 = smov (%p36_p0, %s3044_s5), 0  ;;  %s2732_s8 = int_to_ptr.vmem [resolvable:$true] %s220_s8 }
  0x76   : > { %s217_s11 = sadd.s32 %s1613_s14, %s1514_s10  ;;  %s38_s18 = ssub.s32 %s2491_s24, %s3046_s5 }
  0x77   : > { %s1516_s25 = sshll.u32 %s217_s11, 6  ;;  %s40_s7 = sor.u32 %s39_s12, %s38_s18 }
  0x78   : > { %p130_p5 = scmp.eq.s32.totalorder %s38_s18, 0  ;;  %p41_p7 = scmp.eq.s32.totalorder %s40_s7, 0 }
  0x79   : > { %s2739_s15 = scalar_lea.hbm %s2978_s0, %s1516_s25  ;;  %s3016_s27 = sadd.s32 1, %s2463_s17 }
  0x7a   : > { %s2744_s28 = scalar_select %p130_p5, %s2463_s17, %s3016_s27  }
  0x7b   : > { %s3017_s10 = sadd.s32 1, %s2475_s20  ;;  %s2751_s2 = scalar_lea.sflag [#allocation4], %s206_s26 }
  0x7c   : > { %s2749_s14 = scalar_select %p41_p7, %s2475_s20, %s3017_s10  }
  0x7d   : > { %s2335_s12 = scalar_lea.hbm %s2739_s15, 4096  ;;  %p3018_p12 = scmp.ne.s32.totalorder %s3012_s13, 0 }
  0x7e   : > { %p2336_p10 = scmp.ne.s32.totalorder %s2739_s15, %s2335_s12  ;;  %s2340_s18 = scalar_lea.hbm %s2978_s0, 16384 }
  0x7f   : > { %p2337_p11 = pneg %p3018_p12  ;;  %p2341_p2 = scmp.lt.u32.totalorder %s2739_s15, %s2978_s0 }
  0x80   : > { %p2342_p8 = scmp.lt.u32.totalorder %s2340_s18, %s2335_s12  ;;  %p2344_p3 = scmp.lt.u32.totalorder %s2335_s12, %s2739_s15 }
  0x81   : > { %p2338_p13 = pnand %p2337_p11, %p2336_p10 }
  0x82   : > { %p2343_p4 = por %p2342_p8, %p2341_p2 }
  0x83   : > { %p2339_p1 = pneg %p2338_p13 }
  0x84   : > { %p2345_p6 = por %p2344_p3, %p2343_p4 }
  0x86   : > { %p2346_p9 = pnand %p2345_p6, %p2339_p1 }
  0x88   : > { %2349 = shalt.err (!%p2346_p9)
}
  0x89   : > { %s2350_s26 = scalar_lea.vmem %s2732_s8, 4096  ;;  %s2504_s30 = smov [#allocation3]  }
  0x8a   : > { %p2351_p0 = scmp.ne.s32.totalorder %s2732_s8, %s2350_s26  ;;  %s2355_s27 = sshll.u32 %s2504_s30, 4  ;;  %s2356_s27 = int_to_ptr.vmem [resolvable:$false] %s2355_s27 }
  0x8b   : > { %s2357_s10 = scalar_lea.vmem %s2356_s27, 8192  ;;  %p2358_p10 = scmp.lt.s32.totalorder %s2732_s8, %s2356_s27 }
  0x8c   : > { %p2353_p5 = pnand %p2351_p0, %p2337_p11  ;;  %p2359_p13 = scmp.lt.s32.totalorder %s2357_s10, %s2350_s26 }
  0x8e   : > { %p2354_p7 = pneg %p2353_p5  ;;  %p2360_p2 = por %p2359_p13, %p2358_p10 }
  0x90   : > { %p2361_p8 = pnand %p2360_p2, %p2354_p7 }
  0x92   : > { %2364 = shalt.err (!%p2361_p8)
}
  0x93   : > { %s2505_s12 = smov 256   ;;  %s3019_s4 = smov 8  }
  0x94   : > { %s3020_s11 = smov 128   ;;  %p3021_p11 = scmp.ne.s32.totalorder %s3010_s9, 0 }
  0x95   : > { %2075 = dma.hbm_to_vmem [thread:$0]  (!%p3018_p12), %s2739_s15, 4096, %s2732_s8, %s2751_s2, %s2505_s12, %s3020_s11, %s3019_s4  }
  0x96   : > { %232 = sbr.rel (%p3021_p11) target bundleno = 779 (0x30b), region = 36  ;;  %s234_s18 = sand.u32 (!%p3021_p11), 1, %s2471_s19  }
  0x97   : > { %s1518_s25 = sshll.u32 (!%p3021_p11), %s234_s18, 8  ;;  %s235_s7 = scalar_lea.sflag (!%p3021_p11), [#allocation4], %s234_s18 }
  0x98   : > { %s2784_s26 = scalar_lea.vmem (!%p3021_p11), [#allocation3], %s1518_s25  ;;  %p3022_p1 = scmp.ne.s32.totalorder (!%p3021_p11), %s3005_s6, 0 }
  0x9d   : > { %2438 = dma.done.wait (%p3022_p1), %s235_s7, 4096  }
  0x9e   : > { %2440 = vsyncadd (%p3022_p1), %s235_s7, 4294963200  ;;  %p3023_p4 = scmp.ne.s32.totalorder %s3003_s29, 0 }
  0xa0   : > { %2442 = dma.done.wait (%p3023_p4), [#allocation7], 6144  }
  0xa1   : > { %2444 = vsyncadd (%p3023_p4), [#allocation7], 4294961152 }
  0xa2   : > { %2446 = dma.done.wait (%p3023_p4), [#allocation10], 16  }
  0xa3   : > { %2448 = vsyncadd (%p3023_p4), [#allocation10], 4294967280  ;;  %s272_s2 = sand.u32 1, %s2459_s16   ;;  %p1523_p12 = scmp.ne.s32.totalorder %s2479_s21, 0 }
  0xa4   : > { %s1522_s9 = sshll.u32 %s272_s2, 7  ;;  %v2506_v0 = vmov (!%p1523_p12), 0.0  }
  0xa5   : > { %s2801_s13 = scalar_lea.vmem [#allocation11], %s1522_s9  ;;  %282 = sbr.rel (%p1523_p12) target bundleno = 181 (0xb5), region = 56  ;;  %283 = vst [vmem:[#allocation2] sm:$0xff] (!%p1523_p12), %v2506_v0  ;;  %284 = vst [vmem:[#allocation2 + $0x8] sm:$0xff] (!%p1523_p12), %v2506_v0 }
  0xa6   : > { %285 = vst [vmem:[#allocation2 + $0x10] sm:$0xff] (!%p1523_p12), %v2506_v0  ;;  %286 = vst [vmem:[#allocation2 + $0x18] sm:$0xff] (!%p1523_p12), %v2506_v0 }
  0xa7   : > { %287 = vst [vmem:[#allocation2 + $0x20] sm:$0xff] (!%p1523_p12), %v2506_v0  ;;  %288 = vst [vmem:[#allocation2 + $0x28] sm:$0xff] (!%p1523_p12), %v2506_v0 }
  0xa8   : > { %289 = vst [vmem:[#allocation2 + $0x30] sm:$0xff] (!%p1523_p12), %v2506_v0  ;;  %290 = vst [vmem:[#allocation2 + $0x38] sm:$0xff] (!%p1523_p12), %v2506_v0 }
  0xa9   : > { %291 = vst [vmem:[#allocation2 + $0x40] sm:$0xff] (!%p1523_p12), %v2506_v0  ;;  %292 = vst [vmem:[#allocation2 + $0x48] sm:$0xff] (!%p1523_p12), %v2506_v0 }
  0xaa   : > { %293 = vst [vmem:[#allocation2 + $0x50] sm:$0xff] (!%p1523_p12), %v2506_v0  ;;  %294 = vst [vmem:[#allocation2 + $0x58] sm:$0xff] (!%p1523_p12), %v2506_v0 }
  0xab   : > { %295 = vst [vmem:[#allocation2 + $0x60] sm:$0xff] (!%p1523_p12), %v2506_v0  ;;  %296 = vst [vmem:[#allocation2 + $0x68] sm:$0xff] (!%p1523_p12), %v2506_v0 }
  0xac   : > { %297 = vst [vmem:[#allocation2 + $0x70] sm:$0xff] %v2506_v0  ;;  %298 = vst [vmem:[#allocation2 + $0x78] sm:$0xff] %v2506_v0 }
  0xad   : > { %299 = vst [vmem:[#allocation2 + $0x80] sm:$0xff] %v2506_v0  ;;  %300 = vst [vmem:[#allocation2 + $0x88] sm:$0xff] %v2506_v0 }
  0xae   : > { %301 = vst [vmem:[#allocation2 + $0x90] sm:$0xff] %v2506_v0  ;;  %302 = vst [vmem:[#allocation2 + $0x98] sm:$0xff] %v2506_v0 }
  0xaf   : > { %303 = vst [vmem:[#allocation2 + $0xa0] sm:$0xff] %v2506_v0  ;;  %304 = vst [vmem:[#allocation2 + $0xa8] sm:$0xff] %v2506_v0 }
  0xb0   : > { %305 = vst [vmem:[#allocation2 + $0xb0] sm:$0xff] %v2506_v0  ;;  %306 = vst [vmem:[#allocation2 + $0xb8] sm:$0xff] %v2506_v0 }
  0xb1   : > { %307 = vst [vmem:[#allocation2 + $0xc0] sm:$0xff] %v2506_v0  ;;  %308 = vst [vmem:[#allocation2 + $0xc8] sm:$0xff] %v2506_v0 }
  0xb2   : > { %309 = vst [vmem:[#allocation2 + $0xd0] sm:$0xff] %v2506_v0  ;;  %310 = vst [vmem:[#allocation2 + $0xd8] sm:$0xff] %v2506_v0 }
  0xb3   : > { %311 = vst [vmem:[#allocation2 + $0xe0] sm:$0xff] %v2506_v0  ;;  %312 = vst [vmem:[#allocation2 + $0xe8] sm:$0xff] %v2506_v0 }
  0xb4   : > { %313 = vst [vmem:[#allocation2 + $0xf0] sm:$0xff] %v2506_v0  ;;  %314 = vst [vmem:[#allocation2 + $0xf8] sm:$0xff] %v2506_v0 }
  0xb5 PF: > { %s1524_s29 = sshll.u32 %s2479_s21, 8  ;;  %v2205_v1 = vld [vmem:[%s2784_s26 + $0x4] ss:$8 sps:$4 sm:$0xff]   ;;  %v2203_v19 = vld [vmem:[%s2784_s26] ss:$8 sps:$4 sm:$0xff]   ;;  %p1574_p3 = scmp.ne.s32.totalorder %s2479_s21, 1 }
  0xb6   : > { %s316_s6 = sshra.s32 %s1524_s29, 3  ;;  %v2208_v2 = vld [vmem:[%s2784_s26 + $0x84] ss:$8 sps:$4 sm:$0xff]   ;;  %704 = vmatprep.mubr.bf16.mxu0 %v2205_v1  ;;  %v2206_v20 = vld [vmem:[%s2784_s26 + $0x80] ss:$8 sps:$4 sm:$0xff]  }
  0xb7   : > { %s1525_s15 = sshll.u32 %s316_s6, 2  ;;  %768 = vmatprep.mubr.bf16.mxu1 %v2208_v2  ;;  %v2209_v21 = vld [vmem:[%s2784_s26 + $0x14] ss:$8 sps:$4 sm:$0xff]   ;;  %v2213_v23 = vld [vmem:[%s2784_s26 + $0x10] ss:$8 sps:$4 sm:$0xff]   ;;  %v352_v51 = vld [vmem:[#allocation2] sm:$0xff] }
  0xb8   : > { %s2807_s8 = scalar_lea.vmem [#allocation6], %s1525_s15  ;;  %v2211_v22 = vld [vmem:[%s2784_s26 + $0x94] ss:$8 sps:$4 sm:$0xff]   ;;  %v2214_v24 = vld [vmem:[%s2784_s26 + $0x90] ss:$8 sps:$4 sm:$0xff]   ;;  %v368_v53 = vld [vmem:[#allocation2 + $0x80] sm:$0xff] }
  0xb9   : > { %v2187_v3 = vld [vmem:[%s2807_s8 + $0x40] sm:$0xff]   ;;  %v2189_v5 = vld [vmem:[%s2807_s8 + $0x48] sm:$0xff]   ;;  %v2191_v7 = vld [vmem:[%s2807_s8 + $0x50] sm:$0xff]  }
  0xba   : > { %v2188_v4 = vld [vmem:[%s2807_s8] sm:$0xff]   ;;  %1742 = vmatprep.subr.bf16.mxu0 %v2187_v3  ;;  %2014 = vmatprep.subr.bf16.mxu1 %v2187_v3  ;;  %v2190_v6 = vld [vmem:[%s2807_s8 + $0x8] sm:$0xff]   ;;  %v2192_v8 = vld [vmem:[%s2807_s8 + $0x10] sm:$0xff]  }
  0xbb   : > { %1743 = vmatpush3.bf16.msra.mxu0 %v2188_v4  ;;  %2022 = vmatpush3.bf16.msra.mxu1 %v2188_v4  ;;  %v2193_v9 = vld [vmem:[%s2807_s8 + $0x58] sm:$0xff]   ;;  %v2195_v11 = vld [vmem:[%s2807_s8 + $0x60] sm:$0xff]   ;;  %v2197_v13 = vld [vmem:[%s2807_s8 + $0x68] sm:$0xff]  }
  0xbc   : > { %1744 = vmatprep.subr.bf16.mxu0 %v2189_v5  ;;  %2015 = vmatprep.subr.bf16.mxu1 %v2189_v5  ;;  %v2194_v10 = vld [vmem:[%s2807_s8 + $0x18] sm:$0xff]   ;;  %v2196_v12 = vld [vmem:[%s2807_s8 + $0x20] sm:$0xff]   ;;  %v2198_v14 = vld [vmem:[%s2807_s8 + $0x28] sm:$0xff]  }
  0xbd   : > { %v2199_v15 = vld [vmem:[%s2807_s8 + $0x70] sm:$0xff]   ;;  %v2201_v17 = vld [vmem:[%s2807_s8 + $0x78] sm:$0xff]   ;;  %v2215_v25 = vld [vmem:[%s2784_s26 + $0x24] ss:$8 sps:$4 sm:$0xff]  }
  0xbe   : > { %v2200_v16 = vld [vmem:[%s2807_s8 + $0x30] sm:$0xff]   ;;  %v2202_v18 = vld [vmem:[%s2807_s8 + $0x38] sm:$0xff]   ;;  %v2217_v26 = vld [vmem:[%s2784_s26 + $0xa4] ss:$8 sps:$4 sm:$0xff]  }
  0xbf   : > { %1745 = vmatpush3.bf16.msra.mxu0 %v2190_v6  ;;  %2023 = vmatpush3.bf16.msra.mxu1 %v2190_v6  ;;  %v2219_v27 = vld [vmem:[%s2784_s26 + $0x20] ss:$8 sps:$4 sm:$0xff]   ;;  %v2221_v29 = vld [vmem:[%s2784_s26 + $0x34] ss:$8 sps:$4 sm:$0xff]   ;;  %v2225_v31 = vld [vmem:[%s2784_s26 + $0x30] ss:$8 sps:$4 sm:$0xff]  }
  0xc0   : > { %1746 = vmatprep.subr.bf16.mxu0 %v2191_v7  ;;  %2016 = vmatprep.subr.bf16.mxu1 %v2191_v7  ;;  %v2220_v28 = vld [vmem:[%s2784_s26 + $0xa0] ss:$8 sps:$4 sm:$0xff]   ;;  %v2223_v30 = vld [vmem:[%s2784_s26 + $0xb4] ss:$8 sps:$4 sm:$0xff]   ;;  %v2226_v32 = vld [vmem:[%s2784_s26 + $0xb0] ss:$8 sps:$4 sm:$0xff]  }
  0xc1   : > { %v2227_v33 = vld [vmem:[%s2784_s26 + $0x44] ss:$8 sps:$4 sm:$0xff]   ;;  %v2231_v35 = vld [vmem:[%s2784_s26 + $0x40] ss:$8 sps:$4 sm:$0xff]   ;;  %v2233_v37 = vld [vmem:[%s2784_s26 + $0x54] ss:$8 sps:$4 sm:$0xff]  }
  0xc2   : > { %v2229_v34 = vld [vmem:[%s2784_s26 + $0xc4] ss:$8 sps:$4 sm:$0xff]   ;;  %v2232_v36 = vld [vmem:[%s2784_s26 + $0xc0] ss:$8 sps:$4 sm:$0xff]   ;;  %v2235_v38 = vld [vmem:[%s2784_s26 + $0xd4] ss:$8 sps:$4 sm:$0xff]  }
  0xc3   : > { %1747 = vmatpush3.bf16.msra.mxu0 %v2192_v8  ;;  %2024 = vmatpush3.bf16.msra.mxu1 %v2192_v8  ;;  %v2237_v39 = vld [vmem:[%s2784_s26 + $0x50] ss:$8 sps:$4 sm:$0xff]   ;;  %v2239_v41 = vld [vmem:[%s2784_s26 + $0x64] ss:$8 sps:$4 sm:$0xff]   ;;  %v2243_v43 = vld [vmem:[%s2784_s26 + $0x60] ss:$8 sps:$4 sm:$0xff]  }
  0xc4   : > { %1748 = vmatprep.subr.bf16.mxu0 %v2193_v9  ;;  %2017 = vmatprep.subr.bf16.mxu1 %v2193_v9  ;;  %v2238_v40 = vld [vmem:[%s2784_s26 + $0xd0] ss:$8 sps:$4 sm:$0xff]   ;;  %v2241_v42 = vld [vmem:[%s2784_s26 + $0xe4] ss:$8 sps:$4 sm:$0xff]   ;;  %v2244_v44 = vld [vmem:[%s2784_s26 + $0xe0] ss:$8 sps:$4 sm:$0xff]  }
  0xc5   : > { %v2245_v45 = vld [vmem:[%s2784_s26 + $0x74] ss:$8 sps:$4 sm:$0xff]   ;;  %v2249_v47 = vld [vmem:[%s2784_s26 + $0x70] ss:$8 sps:$4 sm:$0xff]   ;;  %v353_v59 = vld [vmem:[#allocation2 + $0x8] sm:$0xff] }
  0xc6   : > { %v2247_v46 = vld [vmem:[%s2784_s26 + $0xf4] ss:$8 sps:$4 sm:$0xff]   ;;  %v2250_v48 = vld [vmem:[%s2784_s26 + $0xf0] ss:$8 sps:$4 sm:$0xff]   ;;  %v369_v61 = vld [vmem:[#allocation2 + $0x88] sm:$0xff] }
  0xc7   : > { %1749 = vmatpush3.bf16.msra.mxu0 %v2194_v10  ;;  %2025 = vmatpush3.bf16.msra.mxu1 %v2194_v10  ;;  %v354_v7 = vld [vmem:[#allocation2 + $0x10] sm:$0xff] }
  0xc8   : > { %1750 = vmatprep.subr.bf16.mxu0 %v2195_v11  ;;  %2018 = vmatprep.subr.bf16.mxu1 %v2195_v11  ;;  %v370_v9 = vld [vmem:[#allocation2 + $0x90] sm:$0xff] }
  0xcb   : > { %1751 = vmatpush3.bf16.msra.mxu0 %v2196_v12  ;;  %2026 = vmatpush3.bf16.msra.mxu1 %v2196_v12 }
  0xcc   : > { %1752 = vmatprep.subr.bf16.mxu0 %v2197_v13  ;;  %2019 = vmatprep.subr.bf16.mxu1 %v2197_v13 }
  0xcf   : > { %1753 = vmatpush3.bf16.msra.mxu0 %v2198_v14  ;;  %2027 = vmatpush3.bf16.msra.mxu1 %v2198_v14 }
  0xd0   : > { %1754 = vmatprep.subr.bf16.mxu0 %v2199_v15  ;;  %2020 = vmatprep.subr.bf16.mxu1 %v2199_v15  ;;  %v355_v15 = vld [vmem:[#allocation2 + $0x18] sm:$0xff] }
  0xd3   : > { %1755 = vmatpush3.bf16.msra.mxu0 %v2200_v16  ;;  %2028 = vmatpush3.bf16.msra.mxu1 %v2200_v16 }
  0xd4   : > { %1756 = vmatprep.subr.bf16.mxu0 %v2201_v17  ;;  %2021 = vmatprep.subr.bf16.mxu1 %v2201_v17  ;;  %v371_v17 = vld [vmem:[#allocation2 + $0x98] sm:$0xff] }
  0xd7   : > { %1757 = vmatpush3.bf16.msra.mxu0 %v2202_v18  ;;  %2029 = vmatpush3.bf16.msra.mxu1 %v2202_v18 }
  0xda   : > { %705 = vmatmul.mubr.bf16.vlgmr.msra.gmra.mrb[0].mxu0 %v2203_v19  ;;  %769 = vmatmul.mubr.bf16.vlgmr.msra.gmra.mrb[0].mxu1 %v2206_v20 }
  0xdb   : > { %712 = vmatprep.mubr.bf16.mxu0 %v2209_v21  ;;  %776 = vmatprep.mubr.bf16.mxu1 %v2211_v22 }
  0xe2   : > { %713 = vmatmul.mubr.bf16.gmra.mrb[4].mxu0 %v2213_v23  ;;  %777 = vmatmul.mubr.bf16.gmra.mrb[4].mxu1 %v2214_v24 }
  0xe3   : > { %720 = vmatprep.mubr.bf16.mxu0 %v2215_v25  ;;  %784 = vmatprep.mubr.bf16.mxu1 %v2217_v26 }
  0xea   : > { %721 = vmatmul.mubr.bf16.gmra.mrb[8].mxu0 %v2219_v27  ;;  %785 = vmatmul.mubr.bf16.gmra.mrb[8].mxu1 %v2220_v28  ;;  %v356_v27 = vld [vmem:[#allocation2 + $0x20] sm:$0xff] }
  0xeb   : > { %728 = vmatprep.mubr.bf16.mxu0 %v2221_v29  ;;  %792 = vmatprep.mubr.bf16.mxu1 %v2223_v30  ;;  %v372_v29 = vld [vmem:[#allocation2 + $0xa0] sm:$0xff] }
  0xf2   : > { %729 = vmatmul.mubr.bf16.gmra.mrb[12].mxu0 %v2225_v31  ;;  %793 = vmatmul.mubr.bf16.gmra.mrb[12].mxu1 %v2226_v32 }
  0xf3   : > { %736 = vmatprep.mubr.bf16.mxu0 %v2227_v33  ;;  %800 = vmatprep.mubr.bf16.mxu1 %v2229_v34 }
  0xfa   : > { %737 = vmatmul.mubr.bf16.gmra.mrb[16].mxu0 %v2231_v35  ;;  %801 = vmatmul.mubr.bf16.gmra.mrb[16].mxu1 %v2232_v36  ;;  %v357_v35 = vld [vmem:[#allocation2 + $0x28] sm:$0xff] }
  0xfb   : > { %744 = vmatprep.mubr.bf16.mxu0 %v2233_v37  ;;  %808 = vmatprep.mubr.bf16.mxu1 %v2235_v38  ;;  %v373_v37 = vld [vmem:[#allocation2 + $0xa8] sm:$0xff] }
 0x102   : > { %745 = vmatmul.mubr.bf16.gmra.mrb[20].mxu0 %v2237_v39  ;;  %809 = vmatmul.mubr.bf16.gmra.mrb[20].mxu1 %v2238_v40 }
 0x103   : > { %752 = vmatprep.mubr.bf16.mxu0 %v2239_v41  ;;  %816 = vmatprep.mubr.bf16.mxu1 %v2241_v42 }
 0x10a   : > { %753 = vmatmul.mubr.bf16.gmra.mrb[24].mxu0 %v2243_v43  ;;  %817 = vmatmul.mubr.bf16.gmra.mrb[24].mxu1 %v2244_v44 }
 0x10b   : > { %760 = vmatprep.mubr.bf16.mxu0 %v2245_v45  ;;  %824 = vmatprep.mubr.bf16.mxu1 %v2247_v46 }
 0x112   : > { %761 = vmatmul.mubr.bf16.gmra.mrb[28].mxu0 %v2249_v47  ;;  %825 = vmatmul.mubr.bf16.gmra.mrb[28].mxu1 %v2250_v48  ;;  %v358_v47 = vld [vmem:[#allocation2 + $0x30] sm:$0xff] }
 0x1ad   : > { %v1758_v49 = vpop.f32.mrb[0].mxu0  ;;  %v1806_v50 = vpop.f32.mrb[0].mxu1 }
 0x1ae   : > { %v1759_v52 = vpop.f32.mrb[1].mxu0  ;;  %v1807_v54 = vpop.f32.mrb[1].mxu1 }
 0x1af   : > { %v1760_v55 = vadd.f32 %v1759_v52, %v1758_v49  ;;  %v1808_v56 = vadd.f32 %v1807_v54, %v1806_v50  ;;  %v1761_v57 = vpop.f32.mrb[2].mxu0  ;;  %v1809_v58 = vpop.f32.mrb[2].mxu1  ;;  %v374_v49 = vld [vmem:[#allocation2 + $0xb0] sm:$0xff] }
 0x1b0   : > { %v1762_v60 = vpop.f32.mrb[3].mxu0  ;;  %v1810_v62 = vpop.f32.mrb[3].mxu1 }
 0x1b1   : > { %v833_v63 = vadd.f32 %v1760_v55, %v352_v51  ;;  %v849_v0 = vadd.f32 %v1808_v56, %v368_v53  ;;  %v1763_v1 = vadd.f32 %v1762_v60, %v1761_v57  ;;  %v1811_v2 = vadd.f32 %v1810_v62, %v1809_v58  ;;  %v359_v55 = vld [vmem:[#allocation2 + $0x38] sm:$0xff] }
 0x1b2   : > { %v375_v57 = vld [vmem:[#allocation2 + $0xb8] sm:$0xff] }
 0x1b3   : > { %865 = vst [vmem:[#allocation2] sm:$0xff] %v833_v63  ;;  %881 = vst [vmem:[#allocation2 + $0x80] sm:$0xff] %v849_v0  ;;  %v834_v3 = vadd.f32 %v1763_v1, %v353_v59  ;;  %v850_v4 = vadd.f32 %v1811_v2, %v369_v61 }
 0x1b5   : > { %866 = vst [vmem:[#allocation2 + $0x8] sm:$0xff] %v834_v3  ;;  %882 = vst [vmem:[#allocation2 + $0x88] sm:$0xff] %v850_v4  ;;  %v1764_v5 = vpop.f32.mrb[4].mxu0  ;;  %v1812_v6 = vpop.f32.mrb[4].mxu1  ;;  %v360_v3 = vld [vmem:[#allocation2 + $0x40] sm:$0xff] }
 0x1b6   : > { %v1765_v8 = vpop.f32.mrb[5].mxu0  ;;  %v1813_v10 = vpop.f32.mrb[5].mxu1 }
 0x1b7   : > { %v1766_v11 = vadd.f32 %v1765_v8, %v1764_v5  ;;  %v1814_v12 = vadd.f32 %v1813_v10, %v1812_v6  ;;  %v1767_v13 = vpop.f32.mrb[6].mxu0  ;;  %v1815_v14 = vpop.f32.mrb[6].mxu1  ;;  %v376_v5 = vld [vmem:[#allocation2 + $0xc0] sm:$0xff] }
 0x1b8   : > { %v1768_v16 = vpop.f32.mrb[7].mxu0  ;;  %v1816_v18 = vpop.f32.mrb[7].mxu1 }
 0x1b9   : > { %v835_v19 = vadd.f32 %v1766_v11, %v354_v7  ;;  %v851_v20 = vadd.f32 %v1814_v12, %v370_v9  ;;  %v1769_v21 = vadd.f32 %v1768_v16, %v1767_v13  ;;  %v1817_v22 = vadd.f32 %v1816_v18, %v1815_v14  ;;  %v361_v11 = vld [vmem:[#allocation2 + $0x48] sm:$0xff] }
 0x1ba   : > { %v377_v13 = vld [vmem:[#allocation2 + $0xc8] sm:$0xff] }
 0x1bb   : > { %867 = vst [vmem:[#allocation2 + $0x10] sm:$0xff] %v835_v19  ;;  %883 = vst [vmem:[#allocation2 + $0x90] sm:$0xff] %v851_v20  ;;  %v836_v23 = vadd.f32 %v1769_v21, %v355_v15  ;;  %v852_v24 = vadd.f32 %v1817_v22, %v371_v17 }
 0x1bd   : > { %868 = vst [vmem:[#allocation2 + $0x18] sm:$0xff] %v836_v23  ;;  %884 = vst [vmem:[#allocation2 + $0x98] sm:$0xff] %v852_v24  ;;  %v1770_v25 = vpop.f32.mrb[8].mxu0  ;;  %v1818_v26 = vpop.f32.mrb[8].mxu1  ;;  %v362_v23 = vld [vmem:[#allocation2 + $0x50] sm:$0xff] }
 0x1be   : > { %v1771_v28 = vpop.f32.mrb[9].mxu0  ;;  %v1819_v30 = vpop.f32.mrb[9].mxu1 }
 0x1bf   : > { %v1772_v31 = vadd.f32 %v1771_v28, %v1770_v25  ;;  %v1820_v32 = vadd.f32 %v1819_v30, %v1818_v26  ;;  %v1773_v33 = vpop.f32.mrb[10].mxu0  ;;  %v1821_v34 = vpop.f32.mrb[10].mxu1  ;;  %v378_v25 = vld [vmem:[#allocation2 + $0xd0] sm:$0xff] }
 0x1c0   : > { %v1774_v36 = vpop.f32.mrb[11].mxu0  ;;  %v1822_v38 = vpop.f32.mrb[11].mxu1 }
 0x1c1   : > { %v837_v39 = vadd.f32 %v1772_v31, %v356_v27  ;;  %v853_v40 = vadd.f32 %v1820_v32, %v372_v29  ;;  %v1775_v41 = vadd.f32 %v1774_v36, %v1773_v33  ;;  %v1823_v42 = vadd.f32 %v1822_v38, %v1821_v34  ;;  %v363_v31 = vld [vmem:[#allocation2 + $0x58] sm:$0xff] }
 0x1c2   : > { %v379_v33 = vld [vmem:[#allocation2 + $0xd8] sm:$0xff] }
 0x1c3   : > { %869 = vst [vmem:[#allocation2 + $0x20] sm:$0xff] %v837_v39  ;;  %885 = vst [vmem:[#allocation2 + $0xa0] sm:$0xff] %v853_v40  ;;  %v838_v43 = vadd.f32 %v1775_v41, %v357_v35  ;;  %v854_v44 = vadd.f32 %v1823_v42, %v373_v37 }
 0x1c5   : > { %870 = vst [vmem:[#allocation2 + $0x28] sm:$0xff] %v838_v43  ;;  %886 = vst [vmem:[#allocation2 + $0xa8] sm:$0xff] %v854_v44  ;;  %v1776_v45 = vpop.f32.mrb[12].mxu0  ;;  %v1824_v46 = vpop.f32.mrb[12].mxu1  ;;  %v364_v43 = vld [vmem:[#allocation2 + $0x60] sm:$0xff] }
 0x1c6   : > { %v1777_v48 = vpop.f32.mrb[13].mxu0  ;;  %v1825_v50 = vpop.f32.mrb[13].mxu1 }
 0x1c7   : > { %v1778_v51 = vadd.f32 %v1777_v48, %v1776_v45  ;;  %v1826_v52 = vadd.f32 %v1825_v50, %v1824_v46  ;;  %v1779_v53 = vpop.f32.mrb[14].mxu0  ;;  %v1827_v54 = vpop.f32.mrb[14].mxu1  ;;  %v380_v45 = vld [vmem:[#allocation2 + $0xe0] sm:$0xff] }
 0x1c8   : > { %v1780_v56 = vpop.f32.mrb[15].mxu0  ;;  %v1828_v58 = vpop.f32.mrb[15].mxu1 }
 0x1c9   : > { %v839_v59 = vadd.f32 %v1778_v51, %v358_v47  ;;  %v855_v60 = vadd.f32 %v1826_v52, %v374_v49  ;;  %v1781_v61 = vadd.f32 %v1780_v56, %v1779_v53  ;;  %v1829_v62 = vadd.f32 %v1828_v58, %v1827_v54  ;;  %v365_v51 = vld [vmem:[#allocation2 + $0x68] sm:$0xff] }
 0x1ca   : > { %v381_v53 = vld [vmem:[#allocation2 + $0xe8] sm:$0xff] }
 0x1cb   : > { %871 = vst [vmem:[#allocation2 + $0x30] sm:$0xff] %v839_v59  ;;  %887 = vst [vmem:[#allocation2 + $0xb0] sm:$0xff] %v855_v60  ;;  %v840_v63 = vadd.f32 %v1781_v61, %v359_v55  ;;  %v856_v0 = vadd.f32 %v1829_v62, %v375_v57 }
 0x1cd   : > { %872 = vst [vmem:[#allocation2 + $0x38] sm:$0xff] %v840_v63  ;;  %888 = vst [vmem:[#allocation2 + $0xb8] sm:$0xff] %v856_v0  ;;  %v1782_v1 = vpop.f32.mrb[16].mxu0  ;;  %v1830_v2 = vpop.f32.mrb[16].mxu1  ;;  %v366_v63 = vld [vmem:[#allocation2 + $0x70] sm:$0xff] }
 0x1ce   : > { %v1783_v4 = vpop.f32.mrb[17].mxu0  ;;  %v1831_v6 = vpop.f32.mrb[17].mxu1 }
 0x1cf   : > { %v1784_v7 = vadd.f32 %v1783_v4, %v1782_v1  ;;  %v1832_v8 = vadd.f32 %v1831_v6, %v1830_v2  ;;  %v1785_v9 = vpop.f32.mrb[18].mxu0  ;;  %v1833_v10 = vpop.f32.mrb[18].mxu1  ;;  %v382_v1 = vld [vmem:[#allocation2 + $0xf0] sm:$0xff] }
 0x1d0   : > { %v1786_v12 = vpop.f32.mrb[19].mxu0  ;;  %v1834_v14 = vpop.f32.mrb[19].mxu1 }
 0x1d1   : > { %v841_v15 = vadd.f32 %v1784_v7, %v360_v3  ;;  %v857_v16 = vadd.f32 %v1832_v8, %v376_v5  ;;  %v1787_v17 = vadd.f32 %v1786_v12, %v1785_v9  ;;  %v1835_v18 = vadd.f32 %v1834_v14, %v1833_v10  ;;  %v367_v7 = vld [vmem:[#allocation2 + $0x78] sm:$0xff] }
 0x1d2   : > { %v383_v9 = vld [vmem:[#allocation2 + $0xf8] sm:$0xff] }
 0x1d3   : > { %873 = vst [vmem:[#allocation2 + $0x40] sm:$0xff] %v841_v15  ;;  %889 = vst [vmem:[#allocation2 + $0xc0] sm:$0xff] %v857_v16  ;;  %v842_v19 = vadd.f32 %v1787_v17, %v361_v11  ;;  %v858_v20 = vadd.f32 %v1835_v18, %v377_v13  ;;  %v933_v17 = vld [vmem:[#allocation8] sm:$0xff] (!%p1574_p3)  ;;  %v934_v18 = vld [vmem:[#allocation8 + $0x8] sm:$0xff] (!%p1574_p3) }
 0x1d5   : > { %874 = vst [vmem:[#allocation2 + $0x48] sm:$0xff] %v842_v19  ;;  %890 = vst [vmem:[#allocation2 + $0xc8] sm:$0xff] %v858_v20  ;;  %v1788_v21 = vpop.f32.mrb[20].mxu0  ;;  %v1836_v22 = vpop.f32.mrb[20].mxu1  ;;  %v935_v19 = vld [vmem:[#allocation8 + $0x10] sm:$0xff] (!%p1574_p3)  ;;  %v1982_v20 = vpack.c.bf16 (!%p1574_p3), %v934_v18, %v933_v17 }
 0x1d6   : > { %v1789_v24 = vpop.f32.mrb[21].mxu0  ;;  %v1837_v26 = vpop.f32.mrb[21].mxu1 }
 0x1d7   : > { %v1790_v27 = vadd.f32 %v1789_v24, %v1788_v21  ;;  %v1838_v28 = vadd.f32 %v1837_v26, %v1836_v22  ;;  %v1791_v29 = vpop.f32.mrb[22].mxu0  ;;  %v1839_v30 = vpop.f32.mrb[22].mxu1  ;;  %v936_v21 = vld [vmem:[#allocation8 + $0x18] sm:$0xff] (!%p1574_p3)  ;;  %v938_v24 = vld [vmem:[#allocation8 + $0x28] sm:$0xff] (!%p1574_p3)  ;;  %1983 = vmatprep.subr.bf16.mxu0 (!%p1574_p3), %v1982_v20  ;;  %2030 = vmatprep.subr.bf16.mxu1 (!%p1574_p3), %v1982_v20  ;;  %v901_v26 = vld [vmem:[#allocation2] sm:$0xff] (!%p1574_p3) }
 0x1d8   : > { %v1792_v32 = vpop.f32.mrb[23].mxu0  ;;  %v1840_v34 = vpop.f32.mrb[23].mxu1  ;;  %v1986_v22 = vpack.c.bf16 (!%p1574_p3), %v936_v21, %v935_v19  ;;  %1985 = vmatpush3.bf16.msra.mxu0 (!%p1574_p3), %v1982_v20  ;;  %2038 = vmatpush3.bf16.msra.mxu1 (!%p1574_p3), %v1982_v20 }
 0x1d9   : > { %v843_v35 = vadd.f32 %v1790_v27, %v362_v23  ;;  %v859_v36 = vadd.f32 %v1838_v28, %v378_v25  ;;  %v1793_v37 = vadd.f32 %v1792_v32, %v1791_v29  ;;  %v1841_v38 = vadd.f32 %v1840_v34, %v1839_v30  ;;  %v937_v23 = vld [vmem:[#allocation8 + $0x20] sm:$0xff] (!%p1574_p3)  ;;  %v939_v28 = vld [vmem:[#allocation8 + $0x30] sm:$0xff] (!%p1574_p3)  ;;  %v940_v29 = vld [vmem:[#allocation8 + $0x38] sm:$0xff] (!%p1574_p3)  ;;  %1934 = vmatprep.mubr.f32.mxu0 (!%p1574_p3), %v901_v26 }
 0x1da   : > { %1987 = vmatprep.subr.bf16.mxu0 (!%p1574_p3), %v1986_v22  ;;  %2031 = vmatprep.subr.bf16.mxu1 (!%p1574_p3), %v1986_v22  ;;  %v1990_v25 = vpack.c.bf16 (!%p1574_p3), %v938_v24, %v937_v23  ;;  %v917_v27 = vld [vmem:[#allocation2 + $0x80] sm:$0xff] (!%p1574_p3)  ;;  %v1994_v30 = vpack.c.bf16 (!%p1574_p3), %v940_v29, %v939_v28  ;;  %v942_v32 = vld [vmem:[#allocation8 + $0x48] sm:$0xff] (!%p1574_p3)  ;;  %v943_v34 = vld [vmem:[#allocation8 + $0x50] sm:$0xff] (!%p1574_p3) }
 0x1db   : > { %875 = vst [vmem:[#allocation2 + $0x50] sm:$0xff] %v843_v35  ;;  %891 = vst [vmem:[#allocation2 + $0xd0] sm:$0xff] %v859_v36  ;;  %v844_v39 = vadd.f32 %v1793_v37, %v363_v31  ;;  %v860_v40 = vadd.f32 %v1841_v38, %v379_v33  ;;  %1958 = vmatprep.mubr.f32.mxu1 (!%p1574_p3), %v917_v27  ;;  %v941_v31 = vld [vmem:[#allocation8 + $0x40] sm:$0xff] (!%p1574_p3)  ;;  %v944_v35 = vld [vmem:[#allocation8 + $0x58] sm:$0xff] (!%p1574_p3) }
 0x1dc   : > { %1989 = vmatpush3.bf16.msra.mxu0 (!%p1574_p3), %v1986_v22  ;;  %2039 = vmatpush3.bf16.msra.mxu1 (!%p1574_p3), %v1986_v22  ;;  %v1998_v33 = vpack.c.bf16 (!%p1574_p3), %v942_v32, %v941_v31  ;;  %v2002_v36 = vpack.c.bf16 (!%p1574_p3), %v944_v35, %v943_v34  ;;  %v945_v37 = vld [vmem:[#allocation8 + $0x60] sm:$0xff] (!%p1574_p3)  ;;  %v946_v38 = vld [vmem:[#allocation8 + $0x68] sm:$0xff] (!%p1574_p3) }
 0x1dd   : > { %876 = vst [vmem:[#allocation2 + $0x58] sm:$0xff] %v844_v39  ;;  %892 = vst [vmem:[#allocation2 + $0xd8] sm:$0xff] %v860_v40  ;;  %v1794_v41 = vpop.f32.mrb[24].mxu0  ;;  %v1842_v42 = vpop.f32.mrb[24].mxu1  ;;  %1991 = vmatprep.subr.bf16.mxu0 (!%p1574_p3), %v1990_v25  ;;  %2032 = vmatprep.subr.bf16.mxu1 (!%p1574_p3), %v1990_v25  ;;  %v2006_v39 = vpack.c.bf16 (!%p1574_p3), %v946_v38, %v945_v37  ;;  %v947_v40 = vld [vmem:[#allocation8 + $0x70] sm:$0xff] (!%p1574_p3) }
 0x1de   : > { %v1795_v44 = vpop.f32.mrb[25].mxu0  ;;  %v1843_v46 = vpop.f32.mrb[25].mxu1 }
 0x1df   : > { %v1796_v47 = vadd.f32 %v1795_v44, %v1794_v41  ;;  %v1844_v48 = vadd.f32 %v1843_v46, %v1842_v42  ;;  %v1797_v49 = vpop.f32.mrb[26].mxu0  ;;  %v1845_v50 = vpop.f32.mrb[26].mxu1  ;;  %v948_v41 = vld [vmem:[#allocation8 + $0x78] sm:$0xff] (!%p1574_p3)  ;;  %v918_v44 = vld [vmem:[#allocation2 + $0x88] sm:$0xff] (!%p1574_p3)  ;;  %v919_v46 = vld [vmem:[#allocation2 + $0x90] sm:$0xff] (!%p1574_p3) }
 0x1e0   : > { %v1798_v52 = vpop.f32.mrb[27].mxu0  ;;  %v1846_v54 = vpop.f32.mrb[27].mxu1  ;;  %1993 = vmatpush3.bf16.msra.mxu0 (!%p1574_p3), %v1990_v25  ;;  %2040 = vmatpush3.bf16.msra.mxu1 (!%p1574_p3), %v1990_v25  ;;  %v2010_v42 = vpack.c.bf16 (!%p1574_p3), %v948_v41, %v947_v40 }
 0x1e1   : > { %v845_v55 = vadd.f32 %v1796_v47, %v364_v43  ;;  %v861_v56 = vadd.f32 %v1844_v48, %v380_v45  ;;  %v1799_v57 = vadd.f32 %v1798_v52, %v1797_v49  ;;  %v1847_v58 = vadd.f32 %v1846_v54, %v1845_v50  ;;  %1995 = vmatprep.subr.bf16.mxu0 (!%p1574_p3), %v1994_v30  ;;  %v902_v43 = vld [vmem:[#allocation2 + $0x8] sm:$0xff] (!%p1574_p3)  ;;  %v903_v45 = vld [vmem:[#allocation2 + $0x10] sm:$0xff] (!%p1574_p3)  ;;  %v904_v47 = vld [vmem:[#allocation2 + $0x18] sm:$0xff] (!%p1574_p3) }
 0x1e2   : > { %2033 = vmatprep.subr.bf16.mxu1 (!%p1574_p3), %v1994_v30  ;;  %v920_v48 = vld [vmem:[#allocation2 + $0x98] sm:$0xff] (!%p1574_p3)  ;;  %v905_v49 = vld [vmem:[#allocation2 + $0x20] sm:$0xff] (!%p1574_p3)  ;;  %v922_v52 = vld [vmem:[#allocation2 + $0xa8] sm:$0xff] (!%p1574_p3) }
 0x1e3   : > { %877 = vst [vmem:[#allocation2 + $0x60] sm:$0xff] %v845_v55  ;;  %893 = vst [vmem:[#allocation2 + $0xe0] sm:$0xff] %v861_v56  ;;  %v846_v59 = vadd.f32 %v1799_v57, %v365_v51  ;;  %v862_v60 = vadd.f32 %v1847_v58, %v381_v53  ;;  %v921_v50 = vld [vmem:[#allocation2 + $0xa0] sm:$0xff] (!%p1574_p3)  ;;  %v906_v51 = vld [vmem:[#allocation2 + $0x28] sm:$0xff] (!%p1574_p3) }
 0x1e4   : > { %1997 = vmatpush3.bf16.msra.mxu0 (!%p1574_p3), %v1994_v30  ;;  %2041 = vmatpush3.bf16.msra.mxu1 (!%p1574_p3), %v1994_v30  ;;  %v907_v53 = vld [vmem:[#allocation2 + $0x30] sm:$0xff] (!%p1574_p3)  ;;  %v908_v55 = vld [vmem:[#allocation2 + $0x38] sm:$0xff] (!%p1574_p3)  ;;  %v909_v57 = vld [vmem:[#allocation2 + $0x40] sm:$0xff] (!%p1574_p3) }
 0x1e5   : > { %878 = vst [vmem:[#allocation2 + $0x68] sm:$0xff] %v846_v59  ;;  %894 = vst [vmem:[#allocation2 + $0xe8] sm:$0xff] %v862_v60  ;;  %v1800_v61 = vpop.f32.mrb[28].mxu0  ;;  %v1848_v62 = vpop.f32.mrb[28].mxu1  ;;  %1999 = vmatprep.subr.bf16.mxu0 (!%p1574_p3), %v1998_v33  ;;  %2034 = vmatprep.subr.bf16.mxu1 (!%p1574_p3), %v1998_v33  ;;  %v923_v54 = vld [vmem:[#allocation2 + $0xb0] sm:$0xff] (!%p1574_p3)  ;;  %v924_v56 = vld [vmem:[#allocation2 + $0xb8] sm:$0xff] (!%p1574_p3) }
 0x1e6   : > { %v1801_v0 = vpop.f32.mrb[29].mxu0  ;;  %v1849_v2 = vpop.f32.mrb[29].mxu1  ;;  %v925_v58 = vld [vmem:[#allocation2 + $0xc0] sm:$0xff] (!%p1574_p3)  ;;  %v910_v59 = vld [vmem:[#allocation2 + $0x48] sm:$0xff] (!%p1574_p3) }
 0x1e7   : > { %v1802_v3 = vadd.f32 %v1801_v0, %v1800_v61  ;;  %v1850_v4 = vadd.f32 %v1849_v2, %v1848_v62  ;;  %v1803_v5 = vpop.f32.mrb[30].mxu0  ;;  %v1851_v6 = vpop.f32.mrb[30].mxu1  ;;  %900 = sbr.rel (%p1574_p3) target bundleno = 751 (0x2ef), region = 60  ;;  %v926_v60 = vld [vmem:[#allocation2 + $0xc8] sm:$0xff] (!%p1574_p3)  ;;  %v911_v61 = vld [vmem:[#allocation2 + $0x50] sm:$0xff] (!%p1574_p3)  ;;  %v928_v0 = vld [vmem:[#allocation2 + $0xd8] sm:$0xff] (!%p1574_p3) }
 0x1e8   : > { %v1804_v8 = vpop.f32.mrb[31].mxu0  ;;  %v1852_v10 = vpop.f32.mrb[31].mxu1  ;;  %2001 = vmatpush3.bf16.msra.mxu0 (!%p1574_p3), %v1998_v33  ;;  %2042 = vmatpush3.bf16.msra.mxu1 (!%p1574_p3), %v1998_v33  ;;  %v927_v62 = vld [vmem:[#allocation2 + $0xd0] sm:$0xff] (!%p1574_p3) }
 0x1e9   : > { %v847_v11 = vadd.f32 %v1802_v3, %v366_v63  ;;  %v863_v12 = vadd.f32 %v1850_v4, %v382_v1  ;;  %v1805_v13 = vadd.f32 %v1804_v8, %v1803_v5  ;;  %v1853_v14 = vadd.f32 %v1852_v10, %v1851_v6  ;;  %2003 = vmatprep.subr.bf16.mxu0 (!%p1574_p3), %v2002_v36  ;;  %v912_v63 = vld [vmem:[#allocation2 + $0x58] sm:$0xff] (!%p1574_p3) }
 0x1ea   : > { %2035 = vmatprep.subr.bf16.mxu1 (!%p1574_p3), %v2002_v36  ;;  %v913_v1 = vld [vmem:[#allocation2 + $0x60] sm:$0xff] (!%p1574_p3) }
 0x1eb   : > { %879 = vst [vmem:[#allocation2 + $0x70] sm:$0xff] %v847_v11  ;;  %895 = vst [vmem:[#allocation2 + $0xf0] sm:$0xff] %v863_v12  ;;  %v848_v15 = vadd.f32 %v1805_v13, %v367_v7  ;;  %v864_v16 = vadd.f32 %v1853_v14, %v383_v9  ;;  %v929_v2 = vld [vmem:[#allocation2 + $0xe0] sm:$0xff] (!%p1574_p3) }
 0x1ec   : > { %2005 = vmatpush3.bf16.msra.mxu0 (!%p1574_p3), %v2002_v36  ;;  %2043 = vmatpush3.bf16.msra.mxu1 (!%p1574_p3), %v2002_v36  ;;  %v914_v3 = vld [vmem:[#allocation2 + $0x68] sm:$0xff] (!%p1574_p3)  ;;  %v2856_v9 = vld [vmem:[#allocation9] ss:$0 sm:$0xff] (!%p1574_p3) }
 0x1ed   : > { %880 = vst [vmem:[#allocation2 + $0x78] sm:$0xff] %v848_v15  ;;  %896 = vst [vmem:[#allocation2 + $0xf8] sm:$0xff] %v864_v16  ;;  %2007 = vmatprep.subr.bf16.mxu0 (!%p1574_p3), %v2006_v39  ;;  %2036 = vmatprep.subr.bf16.mxu1 (!%p1574_p3), %v2006_v39  ;;  %v930_v4 = vld [vmem:[#allocation2 + $0xe8] sm:$0xff] (!%p1574_p3) }
 0x1f0   : > { %2009 = vmatpush3.bf16.msra.mxu0 %v2006_v39  ;;  %2044 = vmatpush3.bf16.msra.mxu1 %v2006_v39 }
 0x1f1   : > { %2011 = vmatprep.subr.bf16.mxu0 %v2010_v42  ;;  %2037 = vmatprep.subr.bf16.mxu1 %v2010_v42 }
 0x1f2   : > { %v915_v5 = vld [vmem:[#allocation2 + $0x70] sm:$0xff] }
 0x1f3   : > { %v931_v6 = vld [vmem:[#allocation2 + $0xf0] sm:$0xff] }
 0x1f4   : > { %2013 = vmatpush3.bf16.msra.mxu0 %v2010_v42  ;;  %2045 = vmatpush3.bf16.msra.mxu1 %v2010_v42  ;;  %v916_v7 = vld [vmem:[#allocation2 + $0x78] sm:$0xff] }
 0x1f5   : > { %v932_v8 = vld [vmem:[#allocation2 + $0xf8] sm:$0xff] }
 0x1f7   : > { %1935 = vmatmul.mubr.f32.vlgmr.msra.gmra.mrb[0].mxu0 %v902_v43  ;;  %1959 = vmatmul.mubr.f32.vlgmr.msra.gmra.mrb[0].mxu1 %v918_v44 }
 0x1f8   : > { %1937 = vmatprep.mubr.f32.mxu0 %v903_v45  ;;  %1961 = vmatprep.mubr.f32.mxu1 %v919_v46 }
 0x1fb   : > { %1938 = vmatmul.mubr.f32.gmra.mrb[2].mxu0 %v904_v47  ;;  %1962 = vmatmul.mubr.f32.gmra.mrb[2].mxu1 %v920_v48 }
 0x1fc   : > { %1940 = vmatprep.mubr.f32.mxu0 %v905_v49  ;;  %1964 = vmatprep.mubr.f32.mxu1 %v921_v50 }
 0x1ff   : > { %1941 = vmatmul.mubr.f32.gmra.mrb[4].mxu0 %v906_v51  ;;  %1965 = vmatmul.mubr.f32.gmra.mrb[4].mxu1 %v922_v52 }
 0x200   : > { %1943 = vmatprep.mubr.f32.mxu0 %v907_v53  ;;  %1967 = vmatprep.mubr.f32.mxu1 %v923_v54 }
 0x203   : > { %1944 = vmatmul.mubr.f32.gmra.mrb[6].mxu0 %v908_v55  ;;  %1968 = vmatmul.mubr.f32.gmra.mrb[6].mxu1 %v924_v56 }
 0x204   : > { %1946 = vmatprep.mubr.f32.mxu0 %v909_v57  ;;  %1970 = vmatprep.mubr.f32.mxu1 %v925_v58 }
 0x207   : > { %1947 = vmatmul.mubr.f32.gmra.mrb[8].mxu0 %v910_v59  ;;  %1971 = vmatmul.mubr.f32.gmra.mrb[8].mxu1 %v926_v60 }
 0x208   : > { %1949 = vmatprep.mubr.f32.mxu0 %v911_v61  ;;  %1973 = vmatprep.mubr.f32.mxu1 %v927_v62 }
 0x20b   : > { %1950 = vmatmul.mubr.f32.gmra.mrb[10].mxu0 %v912_v63  ;;  %1974 = vmatmul.mubr.f32.gmra.mrb[10].mxu1 %v928_v0 }
 0x20c   : > { %1952 = vmatprep.mubr.f32.mxu0 %v913_v1  ;;  %1976 = vmatprep.mubr.f32.mxu1 %v929_v2 }
 0x20f   : > { %1953 = vmatmul.mubr.f32.gmra.mrb[12].mxu0 %v914_v3  ;;  %1977 = vmatmul.mubr.f32.gmra.mrb[12].mxu1 %v930_v4 }
 0x210   : > { %1955 = vmatprep.mubr.f32.mxu0 %v915_v5  ;;  %1979 = vmatprep.mubr.f32.mxu1 %v931_v6 }
 0x213   : > { %1956 = vmatmul.mubr.f32.gmra.mrb[14].mxu0 %v916_v7  ;;  %1980 = vmatmul.mubr.f32.gmra.mrb[14].mxu1 %v932_v8 }
 0x2ca   : > { %v1936_v10 = vpop.f32.mrb[0].mxu0  ;;  %v1960_v11 = vpop.f32.mrb[0].mxu1 }
 0x2cb   : > { %v1028_v12 = vadd.f32 %v1936_v10, %v2856_v9  ;;  %v1108_v13 = vadd.f32 %v1960_v11, %v2856_v9  ;;  %v1022_v14 = vpop.f32.mrb[1].mxu0  ;;  %v1102_v15 = vpop.f32.mrb[1].mxu1 }
 0x2cc   : > { %v1023_v16 = vadd.f32 %v2856_v9, %v1022_v14  ;;  %v1103_v17 = vadd.f32 %v2856_v9, %v1102_v15 }
 0x2cd   : > { %v1182_v18 = vmax.f32 %v1028_v12, 0.0  ;;  %v1198_v19 = vmax.f32 %v1108_v13, 0.0 }
 0x2ce   : > { %v1181_v20 = vmax.f32 %v1023_v16, 0.0  ;;  %v1197_v21 = vmax.f32 %v1103_v17, 0.0  ;;  %v1939_v22 = vpop.f32.mrb[2].mxu0  ;;  %v1963_v23 = vpop.f32.mrb[2].mxu1 }
 0x2cf   : > { %v1038_v24 = vadd.f32 %v1939_v22, %v2856_v9  ;;  %v1118_v25 = vadd.f32 %v1963_v23, %v2856_v9  ;;  %v1032_v26 = vpop.f32.mrb[3].mxu0  ;;  %v1112_v27 = vpop.f32.mrb[3].mxu1 }
 0x2d0   : > { %v1650_v28 = vpack.c.bf16 %v1182_v18, %v1181_v20  ;;  %v1690_v29 = vpack.c.bf16 %v1198_v19, %v1197_v21  ;;  %v1033_v30 = vadd.f32 %v2856_v9, %v1032_v26  ;;  %v1113_v31 = vadd.f32 %v2856_v9, %v1112_v27 }
 0x2d1   : > { %v1184_v32 = vmax.f32 %v1038_v24, 0.0  ;;  %v1200_v33 = vmax.f32 %v1118_v25, 0.0 }
 0x2d2   : > { %1651 = vst [vmem:[%s2801_s13] sm:$0xff] %v1650_v28   ;;  %1734 = vst [vmem:[%s2801_s13 + $0x40] sm:$0xff] %v1690_v29   ;;  %v1183_v34 = vmax.f32 %v1033_v30, 0.0  ;;  %v1199_v35 = vmax.f32 %v1113_v31, 0.0  ;;  %v1942_v36 = vpop.f32.mrb[4].mxu0  ;;  %v1966_v37 = vpop.f32.mrb[4].mxu1 }
 0x2d3   : > { %v1048_v38 = vadd.f32 %v1942_v36, %v2856_v9  ;;  %v1128_v39 = vadd.f32 %v1966_v37, %v2856_v9  ;;  %v1042_v40 = vpop.f32.mrb[5].mxu0  ;;  %v1122_v41 = vpop.f32.mrb[5].mxu1 }
 0x2d4   : > { %v1655_v42 = vpack.c.bf16 %v1184_v32, %v1183_v34  ;;  %v1695_v43 = vpack.c.bf16 %v1200_v33, %v1199_v35  ;;  %v1043_v44 = vadd.f32 %v2856_v9, %v1042_v40  ;;  %v1123_v45 = vadd.f32 %v2856_v9, %v1122_v41 }
 0x2d5   : > { %v1186_v46 = vmax.f32 %v1048_v38, 0.0  ;;  %v1202_v47 = vmax.f32 %v1128_v39, 0.0 }
 0x2d6   : > { %1727 = vst [vmem:[%s2801_s13 + $0x8] sm:$0xff] %v1655_v42   ;;  %1735 = vst [vmem:[%s2801_s13 + $0x48] sm:$0xff] %v1695_v43   ;;  %v1185_v48 = vmax.f32 %v1043_v44, 0.0  ;;  %v1201_v49 = vmax.f32 %v1123_v45, 0.0  ;;  %v1945_v50 = vpop.f32.mrb[6].mxu0  ;;  %v1969_v51 = vpop.f32.mrb[6].mxu1 }
 0x2d7   : > { %v1058_v52 = vadd.f32 %v1945_v50, %v2856_v9  ;;  %v1138_v53 = vadd.f32 %v1969_v51, %v2856_v9  ;;  %v1052_v54 = vpop.f32.mrb[7].mxu0  ;;  %v1132_v55 = vpop.f32.mrb[7].mxu1 }
 0x2d8   : > { %v1660_v56 = vpack.c.bf16 %v1186_v46, %v1185_v48  ;;  %v1700_v57 = vpack.c.bf16 %v1202_v47, %v1201_v49  ;;  %v1053_v58 = vadd.f32 %v2856_v9, %v1052_v54  ;;  %v1133_v59 = vadd.f32 %v2856_v9, %v1132_v55 }
 0x2d9   : > { %v1188_v60 = vmax.f32 %v1058_v52, 0.0  ;;  %v1204_v61 = vmax.f32 %v1138_v53, 0.0 }
 0x2da   : > { %1728 = vst [vmem:[%s2801_s13 + $0x10] sm:$0xff] %v1660_v56   ;;  %1736 = vst [vmem:[%s2801_s13 + $0x50] sm:$0xff] %v1700_v57   ;;  %v1187_v62 = vmax.f32 %v1053_v58, 0.0  ;;  %v1203_v63 = vmax.f32 %v1133_v59, 0.0  ;;  %v1948_v0 = vpop.f32.mrb[8].mxu0  ;;  %v1972_v1 = vpop.f32.mrb[8].mxu1 }
 0x2db   : > { %v1068_v2 = vadd.f32 %v1948_v0, %v2856_v9  ;;  %v1148_v3 = vadd.f32 %v1972_v1, %v2856_v9  ;;  %v1062_v4 = vpop.f32.mrb[9].mxu0  ;;  %v1142_v5 = vpop.f32.mrb[9].mxu1 }
 0x2dc   : > { %v1665_v6 = vpack.c.bf16 %v1188_v60, %v1187_v62  ;;  %v1705_v7 = vpack.c.bf16 %v1204_v61, %v1203_v63  ;;  %v1063_v8 = vadd.f32 %v2856_v9, %v1062_v4  ;;  %v1143_v10 = vadd.f32 %v2856_v9, %v1142_v5 }
 0x2dd   : > { %v1190_v11 = vmax.f32 %v1068_v2, 0.0  ;;  %v1206_v12 = vmax.f32 %v1148_v3, 0.0 }
 0x2de   : > { %1729 = vst [vmem:[%s2801_s13 + $0x18] sm:$0xff] %v1665_v6   ;;  %1737 = vst [vmem:[%s2801_s13 + $0x58] sm:$0xff] %v1705_v7   ;;  %v1189_v13 = vmax.f32 %v1063_v8, 0.0  ;;  %v1205_v14 = vmax.f32 %v1143_v10, 0.0  ;;  %v1951_v15 = vpop.f32.mrb[10].mxu0  ;;  %v1975_v16 = vpop.f32.mrb[10].mxu1 }
 0x2df   : > { %v1078_v17 = vadd.f32 %v1951_v15, %v2856_v9  ;;  %v1158_v18 = vadd.f32 %v1975_v16, %v2856_v9  ;;  %v1072_v19 = vpop.f32.mrb[11].mxu0  ;;  %v1152_v20 = vpop.f32.mrb[11].mxu1 }
 0x2e0   : > { %v1670_v21 = vpack.c.bf16 %v1190_v11, %v1189_v13  ;;  %v1710_v22 = vpack.c.bf16 %v1206_v12, %v1205_v14  ;;  %v1073_v23 = vadd.f32 %v2856_v9, %v1072_v19  ;;  %v1153_v24 = vadd.f32 %v2856_v9, %v1152_v20 }
 0x2e1   : > { %v1192_v25 = vmax.f32 %v1078_v17, 0.0  ;;  %v1208_v26 = vmax.f32 %v1158_v18, 0.0 }
 0x2e2   : > { %1730 = vst [vmem:[%s2801_s13 + $0x20] sm:$0xff] %v1670_v21   ;;  %1738 = vst [vmem:[%s2801_s13 + $0x60] sm:$0xff] %v1710_v22   ;;  %v1191_v27 = vmax.f32 %v1073_v23, 0.0  ;;  %v1207_v28 = vmax.f32 %v1153_v24, 0.0  ;;  %v1954_v29 = vpop.f32.mrb[12].mxu0  ;;  %v1978_v30 = vpop.f32.mrb[12].mxu1 }
 0x2e3   : > { %v1088_v31 = vadd.f32 %v1954_v29, %v2856_v9  ;;  %v1168_v32 = vadd.f32 %v1978_v30, %v2856_v9  ;;  %v1082_v33 = vpop.f32.mrb[13].mxu0  ;;  %v1162_v34 = vpop.f32.mrb[13].mxu1 }
 0x2e4   : > { %v1675_v35 = vpack.c.bf16 %v1192_v25, %v1191_v27  ;;  %v1715_v36 = vpack.c.bf16 %v1208_v26, %v1207_v28  ;;  %v1083_v37 = vadd.f32 %v2856_v9, %v1082_v33  ;;  %v1163_v38 = vadd.f32 %v2856_v9, %v1162_v34 }
 0x2e5   : > { %v1194_v39 = vmax.f32 %v1088_v31, 0.0  ;;  %v1210_v40 = vmax.f32 %v1168_v32, 0.0 }
 0x2e6   : > { %1731 = vst [vmem:[%s2801_s13 + $0x28] sm:$0xff] %v1675_v35   ;;  %1739 = vst [vmem:[%s2801_s13 + $0x68] sm:$0xff] %v1715_v36   ;;  %v1193_v41 = vmax.f32 %v1083_v37, 0.0  ;;  %v1209_v42 = vmax.f32 %v1163_v38, 0.0  ;;  %v1957_v43 = vpop.f32.mrb[14].mxu0  ;;  %v1981_v44 = vpop.f32.mrb[14].mxu1 }
 0x2e7   : > { %v1098_v45 = vadd.f32 %v1957_v43, %v2856_v9  ;;  %v1178_v46 = vadd.f32 %v1981_v44, %v2856_v9  ;;  %v1092_v47 = vpop.f32.mrb[15].mxu0  ;;  %v1172_v48 = vpop.f32.mrb[15].mxu1 }
 0x2e8   : > { %v1680_v49 = vpack.c.bf16 %v1194_v39, %v1193_v41  ;;  %v1720_v50 = vpack.c.bf16 %v1210_v40, %v1209_v42  ;;  %v1093_v51 = vadd.f32 %v2856_v9, %v1092_v47  ;;  %v1173_v52 = vadd.f32 %v2856_v9, %v1172_v48 }
 0x2e9   : > { %v1196_v53 = vmax.f32 %v1098_v45, 0.0  ;;  %v1212_v54 = vmax.f32 %v1178_v46, 0.0 }
 0x2ea   : > { %1732 = vst [vmem:[%s2801_s13 + $0x30] sm:$0xff] %v1680_v49   ;;  %1740 = vst [vmem:[%s2801_s13 + $0x70] sm:$0xff] %v1720_v50   ;;  %v1195_v55 = vmax.f32 %v1093_v51, 0.0  ;;  %v1211_v56 = vmax.f32 %v1173_v52, 0.0 }
 0x2ec   : > { %v1685_v57 = vpack.c.bf16 %v1196_v53, %v1195_v55  ;;  %v1725_v58 = vpack.c.bf16 %v1212_v54, %v1211_v56 }
 0x2ee   : > { %1733 = vst [vmem:[%s2801_s13 + $0x38] sm:$0xff] %v1685_v57   ;;  %1741 = vst [vmem:[%s2801_s13 + $0x78] sm:$0xff] %v1725_v58  }
 0x2ef PF: > { %s3024_s21 = sld [smem:[#allocation18_spill]]  ;;  %s1646_s30 = sshll.u32 %s2483_s22, 11 }
 0x2f0   : > { %s3025_s12 = sld [smem:[#allocation22_spill]]  ;;  %s1387_s11 = sshll.u32 %s2801_s13, 4  ;;  %s2913_s11 = int_to_ptr.vmem [resolvable:$true] %s1387_s11 }
 0x2f1   : > { %s2917_s18 = scalar_lea.sflag [#allocation5], %s272_s2  ;;  %s2365_s25 = scalar_lea.vmem %s2913_s11, 2048 }
 0x2f2   : > { %p2366_p6 = scmp.ne.s32.totalorder %s2913_s11, %s2365_s25  ;;  %s2507_s22 = smov [#allocation11]  }
 0x2f3   : > { %s2369_s7 = sshll.u32 %s2507_s22, 4  ;;  %s2370_s7 = int_to_ptr.vmem [resolvable:$false] %s2369_s7 }
 0x2f4   : > { %s2371_s26 = scalar_lea.vmem %s2370_s7, 4096  ;;  %p2372_p7 = scmp.lt.s32.totalorder %s2913_s11, %s2370_s7 }
 0x2f5   : > { %p3026_p9 = scmp.ne.s32.totalorder %s3024_s21, 0  ;;  %p2373_p10 = scmp.lt.s32.totalorder %s2371_s26, %s2365_s25 }
 0x2f6   : > { %s2910_s4 = scalar_lea.hbm %s3025_s12, %s1646_s30 }
 0x2f7   : > { %p2367_p0 = pnand %p2366_p6, %p3026_p9  ;;  %p2374_p13 = por %p2373_p10, %p2372_p7 }
 0x2f9   : > { %p2368_p5 = pneg %p2367_p0 }
 0x2fb   : > { %p2375_p2 = pnand %p2374_p13, %p2368_p5 }
 0x2fd   : > { %2378 = shalt.err (!%p2375_p2)
}
 0x2fe   : > { %s2379_s2 = scalar_lea.hbm %s2910_s4, 2048  ;;  %s2383_s29 = scalar_lea.hbm %s3025_s12, 4096 }
 0x2ff   : > { %p2380_p8 = scmp.ne.s32.totalorder %s2910_s4, %s2379_s2  ;;  %p2384_p4 = scmp.lt.u32.totalorder %s2910_s4, %s3025_s12 }
 0x300   : > { %p2385_p12 = scmp.lt.u32.totalorder %s2383_s29, %s2379_s2  ;;  %p2387_p6 = scmp.lt.u32.totalorder %s2379_s2, %s2910_s4 }
 0x301   : > { %p2381_p11 = pnand %p2380_p8, %p3026_p9 }
 0x302   : > { %p2386_p3 = por %p2385_p12, %p2384_p4 }
 0x303   : > { %p2382_p1 = pneg %p2381_p11 }
 0x304   : > { %p2388_p0 = por %p2387_p6, %p2386_p3 }
 0x306   : > { %p2389_p5 = pnand %p2388_p0, %p2382_p1 }
 0x308   : > { %2392 = shalt.err (!%p2389_p5)
}
 0x309   : > { %s2508_s8 = smov 64   ;;  %s2509_s30 = smov 4  }
 0x30a   : > { %2060 = dma.vmem_to_hbm [thread:$0]  (%p3026_p9), %s2913_s11, 2048, %s2910_s4, %s2917_s18, %s2508_s8, %s2508_s8, %s2509_s30  }
 0x30b PF: > { %s3027_s27 = sld [smem:[#allocation17_spill]]  ;;  %s3028_s10 = sld [smem:[#allocation16_spill]] }
 0x30c   : > { %s3029_s25 = sld [smem:[#allocation19_spill]] }
 0x311   : > { %p2087_p7 = scmp.ge.s32.totalorder %s3027_s27, 2  ;;  %s1402_s22 = sand.u32 1, %s3028_s10  }
 0x312   : > { %p3030_p10 = scmp.ne.s32.totalorder %s3029_s25, 0  ;;  %s1403_s7 = scalar_lea.sflag [#allocation5], %s1402_s22 }
 0x314   : > { %p2077_p13 = pnand %p2087_p7, %p3030_p10 }
 0x316   : > { %2450 = dma.done.wait (!%p2077_p13), %s1403_s7, 2048  }
 0x317   : > { %2452 = vsyncadd (!%p2077_p13), %s1403_s7, 4294965248  ;;  %s22_s25 = sadd.s32 1, %s3027_s27   ;;  %s3031_s15 = smov %s2459_s16 }
 0x318   : > { %p19_p2 = scmp.ge.s32.totalorder %s22_s25, 6   ;;  %s3032_s16 = smov %s2463_s17 }
 0x319   : > { %s3033_s17 = smov %s2744_s28  ;;  %s3034_s18 = smov %s2471_s19 }
 0x31a   : > { %s3035_s19 = smov %s2475_s20  ;;  %s3036_s20 = smov %s2749_s14 }
 0x31b   : > { %s3037_s21 = smov %s2487_s23  ;;  %s3038_s22 = smov %s2491_s24 }
 0x31c   : > { %s3039_s23 = smov %s3042_s1  ;;  %s3040_s24 = smov %s3046_s5 }
 0x31d   :  { %21 = sbr.rel (!%p19_p2) target bundleno = 15 (0xf), region = 102 }
 0x324   :  { %1408 = vsyncpa [#allocation4], 1 }
 0x325   :  { %1410 = vsyncpa [#allocation4 + $0x1], 1 }
 0x326   :  { %1411 = vsyncpa [#allocation7], 1 }
 0x327   :  { %1412 = vsyncpa [#allocation10], 1 }
 0x328   :  { %1413 = vsyncpa [#allocation5], 1 }
 0x329   :  { %1415 = vsyncpa [#allocation5 + $0x1], 1 }

</bundles_post_ra>
